<compile_context>
chip_gen: v7x
topology: tpu7x:2x2x1
jax: 0.10.0
libtpu: 0.0.40
codegen_flags: <defaults>
</compile_context>

<pallas_src>
import functools

import jax
import jax.numpy as jnp
from jax.experimental import pallas as pl
from jax.experimental.pallas import tpu as pltpu

BN_EPS = 1e-5
_HIGHEST = jax.lax.Precision.HIGHEST


def _mm(a, b):
    return jnp.matmul(a, b, precision=_HIGHEST)


def _round_up(x, n):
    return ((x + n - 1) // n) * n


def _pick_tile_m(d, m):
    """Per-generation row-tile: target ~1.5/3/6 MiB of X per grid step
    (v5e / v6e / v7x+) so the ~0.35us fixed per-step pipeline cost is amortized
    to <20% of the DMA time; keep it a multiple of 512 (sublane- and
    lane-friendly) and never grossly larger than M."""
    kind = ""
    try:
        kind = jax.devices()[0].device_kind.lower()
    except Exception:  # pragma: no cover - defensive
        pass
    if "v5" in kind:
        target_bytes = 3 * 2**19          # 1.5 MiB
    elif "v6" in kind:
        target_bytes = 3 * 2**20          # 3 MiB
    else:                                 # v7x and newer / unknown
        target_bytes = 6 * 2**20          # 6 MiB
    tile = (target_bytes // (4 * d)) // 512 * 512
    tile = max(1024, min(65536, tile))
    tile = min(tile, max(512, _round_up(m, 512)))
    return int(tile)


# ---------------------------------------------------------------------------
# Pass 1: h1 = X @ W1 + b1 (stored transposed, lane-dense) + sufficient stats
# ---------------------------------------------------------------------------
def _make_stats_kernel(m_rows, blocks_per_core, tile_m):
    def stats_kernel(x_ref, w1_ref, b1_ref, h1_ref, gram_ref, colsum_ref):
        c = pl.program_id(0)        # core-split axis ("parallel")
        i = pl.program_id(1)        # row-tile axis within this core

        @pl.when(i == 0)
        def _():
            gram_ref[...] = jnp.zeros_like(gram_ref)
            colsum_ref[...] = jnp.zeros_like(colsum_ref)

        x = x_ref[...]                                      # (tile_m, d) f32
        # h1^T = W1^T X^T + b1^T  ->  (6, tile_m): lane-dense along the row
        # axis so both the h1 writeback and the pass-2 reads are unmasked.
        # TODO(synk): if pl.lower_as_mlir shows Mosaic materializing a full
        #   (tile_m, d) transpose for this contraction, split it into 512-row
        #   sub-chunks (unrolled fori_loop) so only small tiles get relaid out.
        h1t = jax.lax.dot_general(
            w1_ref[...], x, (((0,), (1,)), ((), ())),
            preferred_element_type=jnp.float32,
            precision=_HIGHEST) + b1_ref[...]
        h1_ref[...] = h1t

        # Mask columns past the true row count M: the ragged last tile of the
        # (un-padded) input and the clamped "phantom" blocks of the 2-way core
        # split must contribute nothing to the batch statistics.
        logical_block = c * blocks_per_core + i
        col_idx = (logical_block * tile_m
                   + jax.lax.broadcasted_iota(jnp.int32, (1, tile_m), 1))
        h1m = jnp.where(col_idx < m_rows, h1t, 0.0)

        gram_ref[...] += jax.lax.dot_general(               # (6, 6) = h1^T h1
            h1m, h1m, (((1,), (1,)), ((), ())),
            preferred_element_type=jnp.float32, precision=_HIGHEST)
        colsum_ref[...] += jnp.sum(h1m, axis=1, keepdims=True)   # (6, 1)

    return stats_kernel


# ---------------------------------------------------------------------------
# Pass 2: out = sigmoid(h1 @ w_eff + b_eff), lane-dense (1, TILE_M) blocks
# ---------------------------------------------------------------------------
def _apply_kernel(h1_ref, w_ref, b_ref, o_ref):
    # (6, tile_m) * (6, 1) summed over sublanes -> (1, tile_m); pure VPU/XLU,
    # no MXU, and the store is a full-width unmasked vst.
    logits = jnp.sum(h1_ref[...] * w_ref[...], axis=0, keepdims=True) + b_ref[0, 0]
    o_ref[...] = jax.nn.sigmoid(logits)


# ---------------------------------------------------------------------------
# Analytic fold of the BN/Linear stack (tiny 6x6 math, plain XLA)
# ---------------------------------------------------------------------------
def _fold_bn_linear_stack(colsum, gram, m_rows, params):
    """Fold BN1..BN3 and Linear2..Linear4 into a (6,1) weight + scalar bias.

    Every pre-BN activation is affine in h1: h = h1 @ A + c, so
        mean(h) = mu @ A + c ,   var(h) = diag(A^T Cov A)
    with mu = E[h1] and Cov = E[h1 h1^T] - mu^T mu (biased == BN training).
    NOTE: the E[x^2]-E[x]^2 form can cancel catastrophically if a channel's
    |mean| >> std; accepted and documented as the conditioning limit here.
    """
    mu = colsum.T / m_rows                                  # (1, 6)
    cov = gram / m_rows - _mm(mu.T, mu)                     # (6, 6)

    a = jnp.eye(6, dtype=jnp.float32)                       # h = h1 @ a + c
    c = jnp.zeros((1, 6), jnp.float32)
    for k in (1, 2, 3):
        mean = _mm(mu, a) + c
        var = jnp.sum(a * _mm(cov, a), axis=0, keepdims=True)
        s = params[f"g{k}"] * jax.lax.rsqrt(var + BN_EPS)
        t = params[f"be{k}"] - mean * s
        a = a * s                                            # fold BN scale
        c = c * s + t                                        # fold BN shift
        w_next = params[f"w{k + 1}"]
        a = _mm(a, w_next)                                   # fold next Linear
        c = _mm(c, w_next) + params[f"b{k + 1}"]
    return a, c                                              # (6, 1), (1, 1)


# ---------------------------------------------------------------------------
# Wrapper
# ---------------------------------------------------------------------------
@functools.partial(jax.jit, static_argnames=("tile_m",))
def final_classifier_forward(x_nhwc, params, tile_m=None):
    """x_nhwc: (N, H, W, dim) float32.  Returns (N, H, W, 1) float32."""
    n, h, w, d = x_nhwc.shape
    m = n * h * w
    x2d = x_nhwc.reshape(m, d).astype(jnp.float32)

    if tile_m is None:
        tile_m = _pick_tile_m(d, m)
    assert tile_m % 128 == 0, "tile_m must be a multiple of 128 (lane-dense)"

    grid_m = pl.cdiv(m, tile_m)
    # 2-way split of the row-tile loop: the leading "parallel" axis uses both
    # TensorCores on v7x; on single-TC chips (v5e/v6e) it just runs serially.
    ncores = 2 if grid_m >= 4 else 1
    bpc = pl.cdiv(grid_m, ncores)                 # blocks per core

    def row_block(c, i):
        # Clamp phantom blocks (only when grid_m is odd) onto the last real
        # block; the in-kernel mask zeroes their statistics contribution and
        # their h1 writeback simply rewrites identical data.
        return jnp.minimum(c * bpc + i, grid_m - 1)

    # Explicit VMEM budget (v7x has only 64 MiB physical / 32 MiB default
    # scoped): double-buffered X tile + double-buffered h1 tile + headroom.
    x_tile_bytes = tile_m * d * 4
    h1_tile_bytes = 8 * tile_m * 4                # 6 rows pad to 8 sublanes
    budget = 2 * x_tile_bytes + 2 * h1_tile_bytes + (1 << 20)
    vmem_limit = int(max(32 << 20, min(48 << 20, 2 * budget)))

    w1 = params["w1"].astype(jnp.float32)         # (d, 6)
    b1_col = params["b1"].astype(jnp.float32).T   # (6, 1)

    # ---- Pass 1: h1 (transposed, lane-dense) + per-core colsum/Gram --------
    h1_t, gram_p, colsum_p = pl.pallas_call(
        _make_stats_kernel(m, bpc, tile_m),
        out_shape=(jax.ShapeDtypeStruct((6, m), jnp.float32),
                   jax.ShapeDtypeStruct((ncores, 6, 6), jnp.float32),
                   jax.ShapeDtypeStruct((ncores, 6, 1), jnp.float32)),
        grid=(ncores, bpc),
        in_specs=[pl.BlockSpec((tile_m, d), lambda c, i: (row_block(c, i), 0)),
                  pl.BlockSpec((d, 6), lambda c, i: (0, 0)),
                  pl.BlockSpec((6, 1), lambda c, i: (0, 0))],
        out_specs=(pl.BlockSpec((6, tile_m), lambda c, i: (0, row_block(c, i))),
                   pl.BlockSpec((None, 6, 6), lambda c, i: (c, 0, 0)),
                   pl.BlockSpec((None, 6, 1), lambda c, i: (c, 0, 0))),
        compiler_params=pltpu.CompilerParams(
            dimension_semantics=("parallel", "arbitrary"),
            vmem_limit_bytes=vmem_limit),
        cost_estimate=pl.CostEstimate(
            flops=int(2 * m * d * 6 + 2 * m * 36),
            transcendentals=0,
            bytes_accessed=int(m * d * 4 + m * 6 * 4)),
    )(x2d, w1, b1_col)

    # ---- Analytic fold of the whole BN/Linear stack -------------------------
    gram = jnp.sum(gram_p, axis=0)                # combine the per-core partials
    colsum = jnp.sum(colsum_p, axis=0)
    w_eff, b_eff = _fold_bn_linear_stack(colsum, gram, m, params)

    # ---- Pass 2: sigmoid(h1 @ w_eff + b_eff), lane-dense in and out ---------
    out_rows = pl.pallas_call(
        _apply_kernel,
        out_shape=jax.ShapeDtypeStruct((1, m), jnp.float32),
        grid=(grid_m,),
        in_specs=[pl.BlockSpec((6, tile_m), lambda i: (0, i)),
                  pl.BlockSpec((6, 1), lambda i: (0, 0)),
                  pl.BlockSpec(memory_space=pltpu.MemorySpace.SMEM)],
        out_specs=pl.BlockSpec((1, tile_m), lambda i: (0, i)),
        compiler_params=pltpu.CompilerParams(
            dimension_semantics=("parallel",),
            vmem_limit_bytes=vmem_limit),
        cost_estimate=pl.CostEstimate(
            flops=int(12 * m),
            transcendentals=int(m),
            bytes_accessed=int(m * 6 * 4 + m * 4)),
    )(h1_t, w_eff, b_eff)

    return out_rows[0, :].reshape(n, h, w, 1)


# ---------------------------------------------------------------------------
# Parameter init (mirrors PyTorch defaults) and pure-JAX reference
# ---------------------------------------------------------------------------
def init_params(key, dim):
    """Linear: weight/bias ~ U(-1/sqrt(fan_in), 1/sqrt(fan_in)); BN: gamma=1,
    beta=0.  Weights stored pre-transposed as (in, out) so forward is x @ W."""
    sizes = [(dim, 6), (6, 4), (4, 2), (2, 1)]
    params = {}
    for i, (fin, fout) in enumerate(sizes, start=1):
        key, kw, kb = jax.random.split(key, 3)
        bound = 1.0 / jnp.sqrt(jnp.float32(fin))
        params[f"w{i}"] = jax.random.uniform(
            kw, (fin, fout), jnp.float32, -bound, bound)
        params[f"b{i}"] = jax.random.uniform(
            kb, (1, fout), jnp.float32, -bound, bound)
    for i, c in zip((1, 2, 3), (6, 4, 2)):
        params[f"g{i}"] = jnp.ones((1, c), jnp.float32)
        params[f"be{i}"] = jnp.zeros((1, c), jnp.float32)
    return params


def _bn_train(h, gamma, beta):
    """BatchNorm with batch statistics over axis 0 (the M pixel rows)."""
    mean = jnp.mean(h, axis=0, keepdims=True)
    var = jnp.mean((h - mean) * (h - mean), axis=0, keepdims=True)  # biased
    return (h - mean) * jax.lax.rsqrt(var + BN_EPS) * gamma + beta


def _reference_forward(x_nhwc, params):
    """Pure-JAX reference (direct, un-folded computation) for sanity checking."""
    n, h_, w_, d = x_nhwc.shape
    h = x_nhwc.reshape(n * h_ * w_, d)
    h = _mm(h, params["w1"]) + params["b1"]
    h = _bn_train(h, params["g1"], params["be1"])
    h = _mm(h, params["w2"]) + params["b2"]
    h = _bn_train(h, params["g2"], params["be2"])
    h = _mm(h, params["w3"]) + params["b3"]
    h = _bn_train(h, params["g3"], params["be3"])
    out = jax.nn.sigmoid(_mm(h, params["w4"]) + params["b4"])
    return out.reshape(n, h_, w_, 1)


if __name__ == "__main__":
    # Full-precision matmuls so kernel and reference agree tightly.
    jax.config.update("jax_default_matmul_precision", "highest")

    key = jax.random.PRNGKey(0)
    k_param, k_x = jax.random.split(key)

    # Small deterministic demo.  M = N*H*W = 1200 with tile_m=256 gives an odd
    # grid (5 tiles) and a ragged last tile, exercising the no-pad masking and
    # the clamped phantom block of the 2-way core split.
    N, H, W, DIM = 2, 30, 20, 32
    params = init_params(k_param, DIM)
    x = jax.random.normal(k_x, (N, H, W, DIM), jnp.float32)

    out = final_classifier_forward(x, params, tile_m=256)
    out = jax.block_until_ready(out)

    ref = _reference_forward(x, params)
    assert out.shape == (N, H, W, 1)
    err = float(jnp.max(jnp.abs(out - ref)))
    assert err < 2e-4, f"max abs error {err}"

    print("KERNEL_OK")
</pallas_src>

<mosaic_0001>
module attributes {stable_mosaic.version = 11 : i64} {
  func.func @stats_kernel(%arg0: i32, %arg1: i32, %arg2: memref<256x32xf32, #tpu.memory_space<vmem>>, %arg3: memref<32x6xf32, #tpu.memory_space<vmem>>, %arg4: memref<6x1xf32, #tpu.memory_space<vmem>>, %arg5: memref<6x256xf32, #tpu.memory_space<vmem>>, %arg6: memref<1x6x6xf32, #tpu.memory_space<vmem>>, %arg7: memref<1x6x1xf32, #tpu.memory_space<vmem>>) attributes {dimension_semantics = [#tpu.dimension_semantics<parallel>, #tpu.dimension_semantics<arbitrary>], iteration_bounds = array<i64: 2, 3>, scalar_prefetch = 0 : i64, scratch_operands = 0 : i64, tpu.core_type = #tpu.core_type<tc>, window_params = [{transform_indices = @transform_0, window_bounds = array<i64: 256, 32>}, {pipeline_mode = #tpu.pipeline_mode<synchronous>, transform_indices = @transform_1, window_bounds = array<i64: 32, 6>}, {pipeline_mode = #tpu.pipeline_mode<synchronous>, transform_indices = @transform_2, window_bounds = array<i64: 6, 1>}, {transform_indices = @transform_3, window_bounds = array<i64: 6, 256>}, {transform_indices = @transform_4, window_bounds = array<i64: 1, 6, 6>}, {transform_indices = @transform_5, window_bounds = array<i64: 1, 6, 1>}]} {
    %c0_i32 = arith.constant 0 : i32
    %0 = arith.cmpi eq, %arg1, %c0_i32 : i32
    %1 = arith.extui %0 : i1 to i32
    %c0_i32_0 = arith.constant 0 : i32
    %2 = arith.cmpi ne, %1, %c0_i32_0 : i32
    scf.if %2 {
      %cst_23 = arith.constant 0.000000e+00 : f32
      %37 = vector.broadcast %cst_23 : f32 to vector<6x6xf32>
      %c0_24 = arith.constant 0 : index
      %c0_25 = arith.constant 0 : index
      %c0_26 = arith.constant 0 : index
      %38 = vector.load %arg6[%c0_24, %c0_25, %c0_26] : memref<1x6x6xf32, #tpu.memory_space<vmem>>, vector<1x6x6xf32>
      %39 = vector.shape_cast %38 : vector<1x6x6xf32> to vector<6x6xf32>
      %40 = vector.shape_cast %37 : vector<6x6xf32> to vector<1x6x6xf32>
      tpu.vector_store %arg6[%c0_24, %c0_25, %c0_26], %40 {strides = array<i32>} : memref<1x6x6xf32, #tpu.memory_space<vmem>>, vector<1x6x6xf32>,
      %cst_27 = arith.constant 0.000000e+00 : f32
      %41 = vector.broadcast %cst_27 : f32 to vector<6x1xf32>
      %c0_28 = arith.constant 0 : index
      %c0_29 = arith.constant 0 : index
      %c0_30 = arith.constant 0 : index
      %42 = vector.load %arg7[%c0_28, %c0_29, %c0_30] : memref<1x6x1xf32, #tpu.memory_space<vmem>>, vector<1x6x1xf32>
      %43 = vector.shape_cast %42 : vector<1x6x1xf32> to vector<6x1xf32>
      %44 = vector.shape_cast %41 : vector<6x1xf32> to vector<1x6x1xf32>
      tpu.vector_store %arg7[%c0_28, %c0_29, %c0_30], %44 {strides = array<i32>} : memref<1x6x1xf32, #tpu.memory_space<vmem>>, vector<1x6x1xf32>,
    } else {
    }
    %c0 = arith.constant 0 : index
    %c0_1 = arith.constant 0 : index
    %3 = vector.load %arg2[%c0, %c0_1] : memref<256x32xf32, #tpu.memory_space<vmem>>, vector<256x32xf32>
    %c0_2 = arith.constant 0 : index
    %c0_3 = arith.constant 0 : index
    %4 = vector.load %arg3[%c0_2, %c0_3] : memref<32x6xf32, #tpu.memory_space<vmem>>, vector<32x6xf32>
    %cst = arith.constant dense<0.000000e+00> : vector<6x256xf32>
    %5 = tpu.matmul %4, %3, %cst {dimension_numbers = #tpu.dot_dimension_numbers<[0], [1], [1], [0], [0, 1, 1, 0], [], []>, precision = #tpu.contract_precision<fp32>} : vector<32x6xf32>, vector<256x32xf32>, vector<6x256xf32> -> vector<6x256xf32>
    %c0_4 = arith.constant 0 : index
    %c0_5 = arith.constant 0 : index
    %6 = vector.load %arg4[%c0_4, %c0_5] : memref<6x1xf32, #tpu.memory_space<vmem>>, vector<6x1xf32>
    %7 = vector.broadcast %6 : vector<6x1xf32> to vector<6x256xf32>
    %8 = arith.addf %5, %7 : vector<6x256xf32>
    %c0_6 = arith.constant 0 : index
    %c0_7 = arith.constant 0 : index
    %9 = vector.load %arg5[%c0_6, %c0_7] : memref<6x256xf32, #tpu.memory_space<vmem>>, vector<6x256xf32>
    tpu.vector_store %arg5[%c0_6, %c0_7], %8 {strides = array<i32>} : memref<6x256xf32, #tpu.memory_space<vmem>>, vector<6x256xf32>,
    %c3_i32 = arith.constant 3 : i32
    %10 = arith.muli %arg0, %c3_i32 : i32
    %11 = arith.addi %10, %arg1 : i32
    %c256_i32 = arith.constant 256 : i32
    %12 = arith.muli %11, %c256_i32 : i32
    %13 = tpu.iota {dimensions = array<i32: 1>} : vector<1x256xi32>
    %14 = vector.broadcast %12 : i32 to vector<1x256xi32>
    %15 = arith.addi %14, %13 : vector<1x256xi32>
    %c1200_i32 = arith.constant 1200 : i32
    %16 = vector.broadcast %c1200_i32 : i32 to vector<1x256xi32>
    %17 = arith.cmpi slt, %15, %16 : vector<1x256xi32>
    %cst_8 = arith.constant 0.000000e+00 : f32
    %18 = vector.shape_cast %17 : vector<1x256xi1> to vector<1x256xi1>
    %19 = vector.broadcast %18 : vector<1x256xi1> to vector<6x256xi1>
    %20 = vector.broadcast %cst_8 : f32 to vector<6x256xf32>
    %21 = arith.select %19, %8, %20 : vector<6x256xi1>, vector<6x256xf32>
    %c0_9 = arith.constant 0 : index
    %c0_10 = arith.constant 0 : index
    %c0_11 = arith.constant 0 : index
    %22 = vector.load %arg6[%c0_9, %c0_10, %c0_11] : memref<1x6x6xf32, #tpu.memory_space<vmem>>, vector<1x6x6xf32>
    %23 = vector.shape_cast %22 : vector<1x6x6xf32> to vector<6x6xf32>
    %cst_12 = arith.constant dense<0.000000e+00> : vector<6x6xf32>
    %24 = tpu.matmul %21, %21, %cst_12 {dimension_numbers = #tpu.dot_dimension_numbers<[1], [1], [0], [0], [0, 0, 1, 0], [], []>, precision = #tpu.contract_precision<fp32>} : vector<6x256xf32>, vector<6x256xf32>, vector<6x6xf32> -> vector<6x6xf32>
    %25 = arith.addf %23, %24 : vector<6x6xf32>
    %c0_13 = arith.constant 0 : index
    %c0_14 = arith.constant 0 : index
    %c0_15 = arith.constant 0 : index
    %26 = vector.load %arg6[%c0_13, %c0_14, %c0_15] : memref<1x6x6xf32, #tpu.memory_space<vmem>>, vector<1x6x6xf32>
    %27 = vector.shape_cast %26 : vector<1x6x6xf32> to vector<6x6xf32>
    %28 = vector.shape_cast %25 : vector<6x6xf32> to vector<1x6x6xf32>
    tpu.vector_store %arg6[%c0_13, %c0_14, %c0_15], %28 {strides = array<i32>} : memref<1x6x6xf32, #tpu.memory_space<vmem>>, vector<1x6x6xf32>,
    %c0_16 = arith.constant 0 : index
    %c0_17 = arith.constant 0 : index
    %c0_18 = arith.constant 0 : index
    %29 = vector.load %arg7[%c0_16, %c0_17, %c0_18] : memref<1x6x1xf32, #tpu.memory_space<vmem>>, vector<1x6x1xf32>
    %30 = vector.shape_cast %29 : vector<1x6x1xf32> to vector<6x1xf32>
    %cst_19 = arith.constant dense<0.000000e+00> : vector<6xf32>
    %31 = vector.multi_reduction <add>, %21, %cst_19 [1] : vector<6x256xf32> to vector<6xf32>
    %32 = vector.shape_cast %31 : vector<6xf32> to vector<6x1xf32>
    %33 = arith.addf %30, %32 : vector<6x1xf32>
    %c0_20 = arith.constant 0 : index
    %c0_21 = arith.constant 0 : index
    %c0_22 = arith.constant 0 : index
    %34 = vector.load %arg7[%c0_20, %c0_21, %c0_22] : memref<1x6x1xf32, #tpu.memory_space<vmem>>, vector<1x6x1xf32>
    %35 = vector.shape_cast %34 : vector<1x6x1xf32> to vector<6x1xf32>
    %36 = vector.shape_cast %33 : vector<6x1xf32> to vector<1x6x1xf32>
    tpu.vector_store %arg7[%c0_20, %c0_21, %c0_22], %36 {strides = array<i32>} : memref<1x6x1xf32, #tpu.memory_space<vmem>>, vector<1x6x1xf32>,
    return
  }
  func.func @transform_0(%arg0: i32, %arg1: i32) -> (i32, i32) {
    %c3_i32 = arith.constant 3 : i32
    %0 = arith.muli %arg0, %c3_i32 : i32
    %1 = arith.addi %0, %arg1 : i32
    %c4_i32 = arith.constant 4 : i32
    %2 = arith.minsi %1, %c4_i32 : i32
    %c0_i32 = arith.constant 0 : i32
    %c0_i32_0 = arith.constant 0 : i32
    return %2, %c0_i32 : i32, i32
  }
  func.func @transform_1(%arg0: i32, %arg1: i32) -> (i32, i32) {
    %c0_i32 = arith.constant 0 : i32
    %c0_i32_0 = arith.constant 0 : i32
    %c0_i32_1 = arith.constant 0 : i32
    return %c0_i32, %c0_i32_0 : i32, i32
  }
  func.func @transform_2(%arg0: i32, %arg1: i32) -> (i32, i32) {
    %c0_i32 = arith.constant 0 : i32
    %c0_i32_0 = arith.constant 0 : i32
    %c0_i32_1 = arith.constant 0 : i32
    return %c0_i32, %c0_i32_0 : i32, i32
  }
  func.func @transform_3(%arg0: i32, %arg1: i32) -> (i32, i32) {
    %c3_i32 = arith.constant 3 : i32
    %0 = arith.muli %arg0, %c3_i32 : i32
    %1 = arith.addi %0, %arg1 : i32
    %c4_i32 = arith.constant 4 : i32
    %2 = arith.minsi %1, %c4_i32 : i32
    %c0_i32 = arith.constant 0 : i32
    %c0_i32_0 = arith.constant 0 : i32
    return %c0_i32, %2 : i32, i32
  }
  func.func @transform_4(%arg0: i32, %arg1: i32) -> (i32, i32, i32) {
    %c0_i32 = arith.constant 0 : i32
    %c0_i32_0 = arith.constant 0 : i32
    %c0_i32_1 = arith.constant 0 : i32
    return %arg0, %c0_i32, %c0_i32_0 : i32, i32, i32
  }
  func.func @transform_5(%arg0: i32, %arg1: i32) -> (i32, i32, i32) {
    %c0_i32 = arith.constant 0 : i32
    %c0_i32_0 = arith.constant 0 : i32
    %c0_i32_1 = arith.constant 0 : i32
    return %arg0, %c0_i32, %c0_i32_0 : i32, i32, i32
  }
}

module attributes {stable_mosaic.version = 11 : i64} {
  func.func @_apply_kernel(%arg0: i32, %arg1: memref<6x256xf32, #tpu.memory_space<vmem>>, %arg2: memref<6x1xf32, #tpu.memory_space<vmem>>, %arg3: memref<1x1xf32, #tpu.memory_space<smem>>, %arg4: memref<1x256xf32, #tpu.memory_space<vmem>>) attributes {dimension_semantics = [#tpu.dimension_semantics<parallel>], iteration_bounds = array<i64: 5>, scalar_prefetch = 0 : i64, scratch_operands = 0 : i64, tpu.core_type = #tpu.core_type<tc>, window_params = [{transform_indices = @transform_0, window_bounds = array<i64: 6, 256>}, {pipeline_mode = #tpu.pipeline_mode<synchronous>, transform_indices = @transform_1, window_bounds = array<i64: 6, 1>}, {transform_indices = @transform_2, window_bounds = array<i64: 1, 1>}, {transform_indices = @transform_3, window_bounds = array<i64: 1, 256>}]} {
    %c0 = arith.constant 0 : index
    %c0_0 = arith.constant 0 : index
    %0 = vector.load %arg1[%c0, %c0_0] : memref<6x256xf32, #tpu.memory_space<vmem>>, vector<6x256xf32>
    %c0_1 = arith.constant 0 : index
    %c0_2 = arith.constant 0 : index
    %1 = vector.load %arg2[%c0_1, %c0_2] : memref<6x1xf32, #tpu.memory_space<vmem>>, vector<6x1xf32>
    %2 = vector.broadcast %1 : vector<6x1xf32> to vector<6x256xf32>
    %3 = arith.mulf %0, %2 : vector<6x256xf32>
    %cst = arith.constant dense<0.000000e+00> : vector<256xf32>
    %4 = vector.multi_reduction <add>, %3, %cst [0] : vector<6x256xf32> to vector<256xf32>
    %5 = vector.shape_cast %4 : vector<256xf32> to vector<1x256xf32>
    %c0_3 = arith.constant 0 : index
    %c0_4 = arith.constant 0 : index
    %6 = memref.load %arg3[%c0_3, %c0_4] : memref<1x1xf32, #tpu.memory_space<smem>>
    %7 = vector.broadcast %6 : f32 to vector<1x256xf32>
    %8 = arith.addf %5, %7 : vector<1x256xf32>
    %9 = arith.negf %8 : vector<1x256xf32>
    %10 = math.exp %9 : vector<1x256xf32>
    %cst_5 = arith.constant 1.000000e+00 : f32
    %11 = vector.broadcast %cst_5 : f32 to vector<1x256xf32>
    %12 = arith.addf %11, %10 : vector<1x256xf32>
    %13 = arith.divf %11, %12 : vector<1x256xf32>
    %c0_6 = arith.constant 0 : index
    %c0_7 = arith.constant 0 : index
    %14 = vector.load %arg4[%c0_6, %c0_7] : memref<1x256xf32, #tpu.memory_space<vmem>>, vector<1x256xf32>
    tpu.vector_store %arg4[%c0_6, %c0_7], %13 {strides = array<i32>} : memref<1x256xf32, #tpu.memory_space<vmem>>, vector<1x256xf32>,
    return
  }
  func.func @transform_0(%arg0: i32) -> (i32, i32) {
    %c0_i32 = arith.constant 0 : i32
    %c0_i32_0 = arith.constant 0 : i32
    return %c0_i32, %arg0 : i32, i32
  }
  func.func @transform_1(%arg0: i32) -> (i32, i32) {
    %c0_i32 = arith.constant 0 : i32
    %c0_i32_0 = arith.constant 0 : i32
    %c0_i32_1 = arith.constant 0 : i32
    return %c0_i32, %c0_i32_0 : i32, i32
  }
  func.func @transform_2(%arg0: i32) -> (i32, i32) {
    %c0_i32 = arith.constant 0 : i32
    %c0_i32_0 = arith.constant 0 : i32
    %c0_i32_1 = arith.constant 0 : i32
    return %c0_i32, %c0_i32_0 : i32, i32
  }
  func.func @transform_3(%arg0: i32) -> (i32, i32) {
    %c0_i32 = arith.constant 0 : i32
    %c0_i32_0 = arith.constant 0 : i32
    return %c0_i32, %arg0 : i32, i32
  }
}

</mosaic_0001>

<bundles_post_ra>
// kernel: squeeze.1
= control target key start
LH: loop header
LB: loop body
LE: loop exit
PB: predicated region body
PF: predicated region fallthrough
CT: control target
= control target key end

     0   :  { %s7_s6 = smov 3  ;;  %s214_s9 = smov 3  ;;  %vm219_vm0 = vcmask 916480   ;;  %vm235_vm1 = vcmask 949248   ;;  %vm250_vm2 = vcmask 982016   ;;  %vm266_vm3 = vcmask 1014784   ;;  %s656_s0 = inlined_call_operand.vmem [shape: f32[1200], index: 0, kind: input, shape index: {}]   ;;  %s657_s1 = inlined_call_operand.vmem [shape: f32[2,30,20,1], index: 1, kind: output, shape index: {}]  }
   0x1   :  { %v276_v0 = vld [vmem:[%s656_s0 + $0x2] ss:$5 sm:%s7_s6]   ;;  %s217_s10 = smov 3  ;;  %s371_s11 = smov 124   ;;  %v325_v1 = vld [vmem:[%s656_s0 + $0x1] ss:$5 sm:%s214_s9]  }
   0x2   :  { %9 = vrot.lane.b32.xlu0 %v276_v0, %s371_s11  ;;  %s15_s14 = smov 3  ;;  %v326_v2 = vld [vmem:[%s656_s0 + $0x2] ss:$5 sm:%s217_s10]   ;;  %s230_s19 = smov 3  ;;  %v296_v23 = vld [vmem:[%s656_s0 + $0x4] sm:$0x1]  }
   0x3   :  { %v278_v3 = vld [vmem:[%s656_s0 + $0x4] ss:$5 sm:%s15_s14]   ;;  %v220_v4 = vsel %vm219_vm0, %v326_v2, %v325_v1  ;;  %v329_v5 = vld [vmem:[%s656_s0 + $0x3] ss:$5 sm:%s230_s19]   ;;  %s233_s22 = smov 3  ;;  %s372_s23 = smov 16  }
   0x4   :  { %221 = vrot.lane.b32.xlu1 %v220_v4, %s372_s23  ;;  %v330_v6 = vld [vmem:[%s656_s0 + $0x4] ss:$5 sm:%s233_s22]   ;;  %s245_s26 = smov 3  ;;  %s248_s27 = smov 3  ;;  %vm4_vm4 = vcmask 162816   ;;  %vm223_vm5 = vcmask 130048  }
   0x5   :  { %s373_s28 = smov 120   ;;  %v236_v7 = vsel %vm235_vm1, %v330_v6, %v329_v5  ;;  %v246_v8 = vld [vmem:[%s656_s0] ss:$5 sm:%s245_s26]   ;;  %s261_s2 = smov 3  ;;  %v333_v9 = vld [vmem:[%s656_s0 + $0x1] ss:$5 sm:%s248_s27]  }
   0x6   :  { %17 = vrot.lane.b32.xlu0 %v278_v3, %s373_s28  ;;  %v336_v10 = vld [vmem:[%s656_s0 + $0x2] ss:$5 sm:%s261_s2]   ;;  %s264_s7 = smov 3  ;;  %v251_v11 = vsel %vm250_vm2, %v333_v9, %v246_v8  ;;  %s23_s10 = smov 3  ;;  %v305_v28 = vld [vmem:[%s656_s0 + $0x4] sm:$0x1]  }
   0x7   :  { %v337_v12 = vld [vmem:[%s656_s0 + $0x3] ss:$5 sm:%s264_s7]   ;;  %s374_s11 = smov 12   ;;  %s375_s12 = smov 8   ;;  %v314_v34 = vld [vmem:[%s656_s0 + $0x4] sm:$0x1]  }
   0x8   :  { %237 = vrot.lane.b32.xlu1 %v236_v7, %s374_s11  ;;  %v267_v13 = vsel %vm266_vm3, %v337_v12, %v336_v10  ;;  %v280_v14 = vld [vmem:[%s656_s0 + $0x1] ss:$5 sm:%s23_s10]   ;;  %s31_s15 = smov 3  ;;  %s38_s16 = smov 3  ;;  %vm226_vm6 = vcmask 162944   ;;  %vm239_vm7 = vcmask 97280  }
   0x9   :  { %s376_s17 = smov 4   ;;  %s377_s18 = smov 116   ;;  %v282_v15 = vld [vmem:[%s656_s0 + $0x3] ss:$5 sm:%s31_s15]   ;;  %v323_v39 = vld [vmem:[%s656_s0 + $0x4] sm:$0x1]  }
   0xa   :  { %252 = vrot.lane.b32.xlu0 %v251_v11, %s375_s12  ;;  %v39_v16 = vld [vmem:[%s656_s0] ss:$5 sm:%s38_s16]   ;;  %s46_s23 = smov 3  ;;  %s54_s24 = smov 3  ;;  %vm242_vm8 = vcmask 162912   ;;  %vm254_vm9 = vcmask 64512  }
   0xb   :  { %s378_s25 = smov 112   ;;  %s379_s26 = smov 108   ;;  %v285_v17 = vld [vmem:[%s656_s0 + $0x2] ss:$5 sm:%s46_s23]   ;;  %vm257_vm10 = vcmask 162880   ;;  %vm270_vm11 = vcmask 31744  }
   0xc   :  { %268 = vrot.lane.b32.xlu1 %v267_v13, %s376_s17  ;;  %v287_v18 = vld [vmem:[%s656_s0 + $0x4] ss:$5 sm:%s54_s24]   ;;  %s62_s2 = smov 3  ;;  %s70_s3 = smov 3  ;;  %vm273_vm12 = vcmask 162848  }
   0xd   :  { %s380_s4 = smov 104   ;;  %s381_s5 = smov 100   ;;  %v289_v19 = vld [vmem:[%s656_s0 + $0x1] ss:$5 sm:%s62_s2]  }
   0xe   :  { %25 = vrot.lane.b32.xlu0 %v280_v14, %s377_s18  ;;  %v291_v20 = vld [vmem:[%s656_s0 + $0x3] ss:$5 sm:%s70_s3]   ;;  %s77_s10 = smov 3  ;;  %s85_s11 = smov 3 }
   0xf   :  { %s382_s12 = smov 96   ;;  %s383_s13 = smov 92   ;;  %v78_v21 = vld [vmem:[%s656_s0] ss:$5 sm:%s77_s10]  }
  0x10   :  { %33 = vrot.lane.b32.xlu1 %v282_v15, %s378_s25  ;;  %v294_v22 = vld [vmem:[%s656_s0 + $0x2] ss:$5 sm:%s85_s11]   ;;  %s100_s18 = smov 3  ;;  %s384_s19 = smov 88  }
  0x11   :  { %s385_s20 = smov 84   ;;  %v298_v24 = vld [vmem:[%s656_s0 + $0x1] ss:$5 sm:%s100_s18]   ;;  %s108_s25 = smov 3 }
  0x12   :  { %40 = vrot.lane.b32.xlu0 %v39_v16, %s379_s26  ;;  %s115_s26 = smov 3  ;;  %s386_s27 = smov 80   ;;  %v300_v25 = vld [vmem:[%s656_s0 + $0x3] ss:$5 sm:%s108_s25]  }
  0x13   :  { %s387_s28 = smov 76   ;;  %v116_v26 = vld [vmem:[%s656_s0] ss:$5 sm:%s115_s26]   ;;  %s389_s6 = smov 68  }
  0x14   :  { %48 = vrot.lane.b32.xlu1 %v285_v17, %s380_s4  ;;  %s123_s4 = smov 3  ;;  %s138_s11 = smov 3 }
  0x15   :  { %v303_v27 = vld [vmem:[%s656_s0 + $0x2] ss:$5 sm:%s123_s4]   ;;  %s391_s14 = smov 60   ;;  %v307_v29 = vld [vmem:[%s656_s0 + $0x1] ss:$5 sm:%s138_s11]   ;;  %s392_s21 = smov 56  }
  0x16   :  { %56 = vrot.lane.b32.xlu0 %v287_v18, %s381_s5  ;;  %s388_s5 = smov 72   ;;  %s393_s22 = smov 52  }
  0x17   :  { %s394_s2 = smov 48   ;;  %s184_s10 = smov 3 }
  0x18   :  { %64 = vrot.lane.b32.xlu1 %v289_v19, %s382_s12  ;;  %s146_s12 = smov 3  ;;  %s191_s11 = smov 3  ;;  %v318_v36 = vld [vmem:[%s656_s0 + $0x3] ss:$5 sm:%s184_s10]  }
  0x19   :  { %v309_v30 = vld [vmem:[%s656_s0 + $0x3] ss:$5 sm:%s146_s12]   ;;  %s396_s12 = smov 40   ;;  %s199_s18 = smov 3 }
  0x1a   :  { %72 = vrot.lane.b32.xlu0 %v291_v20, %s383_s13  ;;  %s390_s13 = smov 64   ;;  %v192_v37 = vld [vmem:[%s656_s0] ss:$5 sm:%s191_s11]   ;;  %s401_s25 = smov 20  }
  0x1b   :  { %v321_v38 = vld [vmem:[%s656_s0 + $0x2] ss:$5 sm:%s199_s18]  }
  0x1c   :  { %79 = vrot.lane.b32.xlu1 %v78_v21, %s384_s19  ;;  %s153_s19 = smov 3 }
  0x1d   :  { %v154_v31 = vld [vmem:[%s656_s0] ss:$5 sm:%s153_s19]   ;;  %s398_s19 = smov 32  }
  0x1e   :  { %87 = vrot.lane.b32.xlu0 %v294_v22, %s385_s20  ;;  %s161_s20 = smov 3 }
  0x1f   :  { %v312_v32 = vld [vmem:[%s656_s0 + $0x2] ss:$5 sm:%s161_s20]   ;;  %s399_s20 = smov 28  }
  0x20   :  { %94 = vrot.lane.b32.xlu1 %v296_v23, %s386_s27  ;;  %s2_s27 = smov 3 }
  0x21   :  { %v3_v33 = vld [vmem:[%s656_s0] ss:$5 sm:%s2_s27]  }
  0x22   :  { %102 = vrot.lane.b32.xlu0 %v298_v24, %s387_s28  ;;  %s176_s28 = smov 3  ;;  %5 = vst.msk [vmem:[%s657_s1] ss:$34 sm:$0x3] %vm4_vm4, %v3_v33  }
  0x23   :  { %v316_v35 = vld [vmem:[%s656_s0 + $0x1] ss:$5 sm:%s176_s28]   ;;  %s400_s0 = smov 24  }
  0x24   :  { %110 = vrot.lane.b32.xlu1 %v300_v25, %s388_s5  ;;  %s395_s5 = smov 44  }
  0x26   :  { %117 = vrot.lane.b32.xlu0 %v116_v26, %s389_s6 }
  0x28   :  { %125 = vrot.lane.b32.xlu1 %v303_v27, %s390_s13  ;;  %s397_s13 = smov 36  }
  0x2a   :  { %132 = vrot.lane.b32.xlu0 %v305_v28, %s391_s14 }
  0x2c   :  { %140 = vrot.lane.b32.xlu1 %v307_v29, %s392_s21 }
  0x2e   :  { %148 = vrot.lane.b32.xlu0 %v309_v30, %s393_s22 }
  0x30   :  { %155 = vrot.lane.b32.xlu1 %v154_v31, %s394_s2 }
  0x32   :  { %163 = vrot.lane.b32.xlu0 %v312_v32, %s395_s5 }
  0x34   :  { %170 = vrot.lane.b32.xlu1 %v314_v34, %s396_s12 }
  0x36   :  { %178 = vrot.lane.b32.xlu0 %v316_v35, %s397_s13 }
  0x38   :  { %186 = vrot.lane.b32.xlu1 %v318_v36, %s398_s19 }
  0x3a   :  { %193 = vrot.lane.b32.xlu0 %v192_v37, %s399_s20 }
  0x3c   :  { %201 = vrot.lane.b32.xlu1 %v321_v38, %s400_s0 }
  0x3e   :  { %208 = vrot.lane.b32.xlu0 %v323_v39, %s401_s25 }
  0x74   :  { %v10_v40 = vpop.permute.xlu0 %9  }
  0x75   :  { %277 = vst.msk [vmem:[%s657_s1 + $0xd] ss:$34 sm:$0x3] %vm4_vm4, %v10_v40  }
  0x76   :  { %v222_v41 = vpop.permute.xlu1 %221  }
  0x77   :  { %327 = vst.msk [vmem:[%s657_s1 + $0xc] ss:$34 sm:$0x3] %vm223_vm5, %v222_v41  }
  0x78   :  { %v18_v42 = vpop.permute.xlu0 %17   ;;  %328 = vst.msk [vmem:[%s657_s1 + $0xc] ss:$34 sm:$0x3] %vm226_vm6, %v222_v41  }
  0x79   :  { %279 = vst.msk [vmem:[%s657_s1 + $0x1a] ss:$34 sm:$0x3] %vm4_vm4, %v18_v42  }
  0x7a   :  { %v238_v43 = vpop.permute.xlu1 %237  }
  0x7b   :  { %331 = vst.msk [vmem:[%s657_s1 + $0x19] ss:$34 sm:$0x3] %vm239_vm7, %v238_v43  }
  0x7c   :  { %v253_v44 = vpop.permute.xlu0 %252   ;;  %332 = vst.msk [vmem:[%s657_s1 + $0x19] ss:$34 sm:$0x3] %vm242_vm8, %v238_v43  }
  0x7d   :  { %334 = vst.msk [vmem:[%s657_s1 + $0x6] ss:$34 sm:$0x3] %vm254_vm9, %v253_v44  }
  0x7e   :  { %335 = vst.msk [vmem:[%s657_s1 + $0x6] ss:$34 sm:$0x3] %vm257_vm10, %v253_v44   ;;  %v269_v45 = vpop.permute.xlu1 %268  }
  0x7f   :  { %338 = vst.msk [vmem:[%s657_s1 + $0x13] ss:$34 sm:$0x3] %vm270_vm11, %v269_v45  }
  0x80   :  { %v26_v46 = vpop.permute.xlu0 %25   ;;  %339 = vst.msk [vmem:[%s657_s1 + $0x13] ss:$34 sm:$0x3] %vm273_vm12, %v269_v45  }
  0x81   :  { %281 = vst.msk [vmem:[%s657_s1 + $0x7] ss:$34 sm:$0x3] %vm4_vm4, %v26_v46  }
  0x82   :  { %v34_v47 = vpop.permute.xlu1 %33  }
  0x83   :  { %283 = vst.msk [vmem:[%s657_s1 + $0x14] ss:$34 sm:$0x3] %vm4_vm4, %v34_v47  }
  0x84   :  { %v41_v48 = vpop.permute.xlu0 %40  }
  0x85   :  { %284 = vst.msk [vmem:[%s657_s1 + $0x1] ss:$34 sm:$0x3] %vm4_vm4, %v41_v48  }
  0x86   :  { %v49_v49 = vpop.permute.xlu1 %48  }
  0x87   :  { %286 = vst.msk [vmem:[%s657_s1 + $0xe] ss:$34 sm:$0x3] %vm4_vm4, %v49_v49  }
  0x88   :  { %v57_v50 = vpop.permute.xlu0 %56  }
  0x89   :  { %288 = vst.msk [vmem:[%s657_s1 + $0x1b] ss:$34 sm:$0x3] %vm4_vm4, %v57_v50  }
  0x8a   :  { %v65_v51 = vpop.permute.xlu1 %64  }
  0x8b   :  { %290 = vst.msk [vmem:[%s657_s1 + $0x8] ss:$34 sm:$0x3] %vm4_vm4, %v65_v51  }
  0x8c   :  { %v73_v52 = vpop.permute.xlu0 %72  }
  0x8d   :  { %292 = vst.msk [vmem:[%s657_s1 + $0x15] ss:$34 sm:$0x3] %vm4_vm4, %v73_v52  }
  0x8e   :  { %v80_v53 = vpop.permute.xlu1 %79  }
  0x8f   :  { %293 = vst.msk [vmem:[%s657_s1 + $0x2] ss:$34 sm:$0x3] %vm4_vm4, %v80_v53  }
  0x90   :  { %v88_v54 = vpop.permute.xlu0 %87  }
  0x91   :  { %295 = vst.msk [vmem:[%s657_s1 + $0xf] ss:$34 sm:$0x3] %vm4_vm4, %v88_v54  }
  0x92   :  { %v95_v55 = vpop.permute.xlu1 %94  }
  0x93   :  { %297 = vst.msk [vmem:[%s657_s1 + $0x1c] sm:$0x1] %vm4_vm4, %v95_v55  }
  0x94   :  { %v103_v56 = vpop.permute.xlu0 %102  }
  0x95   :  { %299 = vst.msk [vmem:[%s657_s1 + $0x9] ss:$34 sm:$0x3] %vm4_vm4, %v103_v56  }
  0x96   :  { %v111_v57 = vpop.permute.xlu1 %110  }
  0x97   :  { %301 = vst.msk [vmem:[%s657_s1 + $0x16] ss:$34 sm:$0x3] %vm4_vm4, %v111_v57  }
  0x98   :  { %v118_v58 = vpop.permute.xlu0 %117  }
  0x99   :  { %302 = vst.msk [vmem:[%s657_s1 + $0x3] ss:$34 sm:$0x3] %vm4_vm4, %v118_v58  }
  0x9a   :  { %v126_v59 = vpop.permute.xlu1 %125  }
  0x9b   :  { %304 = vst.msk [vmem:[%s657_s1 + $0x10] ss:$34 sm:$0x3] %vm4_vm4, %v126_v59  }
  0x9c   :  { %v133_v60 = vpop.permute.xlu0 %132  }
  0x9d   :  { %306 = vst.msk [vmem:[%s657_s1 + $0x1d] sm:$0x1] %vm4_vm4, %v133_v60  }
  0x9e   :  { %v141_v61 = vpop.permute.xlu1 %140  }
  0x9f   :  { %308 = vst.msk [vmem:[%s657_s1 + $0xa] ss:$34 sm:$0x3] %vm4_vm4, %v141_v61  }
  0xa0   :  { %v149_v62 = vpop.permute.xlu0 %148  }
  0xa1   :  { %310 = vst.msk [vmem:[%s657_s1 + $0x17] ss:$34 sm:$0x3] %vm4_vm4, %v149_v62  }
  0xa2   :  { %v156_v63 = vpop.permute.xlu1 %155  }
  0xa3   :  { %311 = vst.msk [vmem:[%s657_s1 + $0x4] ss:$34 sm:$0x3] %vm4_vm4, %v156_v63  }
  0xa4   :  { %v164_v0 = vpop.permute.xlu0 %163  }
  0xa5   :  { %313 = vst.msk [vmem:[%s657_s1 + $0x11] ss:$34 sm:$0x3] %vm4_vm4, %v164_v0  }
  0xa6   :  { %v171_v1 = vpop.permute.xlu1 %170  }
  0xa7   :  { %315 = vst.msk [vmem:[%s657_s1 + $0x20] sm:$0x1] %vm4_vm4, %v171_v1  }
  0xa8   :  { %v179_v2 = vpop.permute.xlu0 %178  }
  0xa9   :  { %317 = vst.msk [vmem:[%s657_s1 + $0xb] ss:$34 sm:$0x3] %vm4_vm4, %v179_v2  }
  0xaa   :  { %v187_v3 = vpop.permute.xlu1 %186  }
  0xab   :  { %319 = vst.msk [vmem:[%s657_s1 + $0x18] ss:$34 sm:$0x3] %vm4_vm4, %v187_v3  }
  0xac   :  { %v194_v4 = vpop.permute.xlu0 %193  }
  0xad   :  { %320 = vst.msk [vmem:[%s657_s1 + $0x5] ss:$34 sm:$0x3] %vm4_vm4, %v194_v4  }
  0xae   :  { %v202_v5 = vpop.permute.xlu1 %201  }
  0xaf   :  { %322 = vst.msk [vmem:[%s657_s1 + $0x12] ss:$34 sm:$0x3] %vm4_vm4, %v202_v5  }
  0xb0   :  { %v209_v6 = vpop.permute.xlu0 %208  }
  0xb1   :  { %324 = vst.msk [vmem:[%s657_s1 + $0x21] sm:$0x1] %vm4_vm4, %v209_v6  }

// kernel: final_classifier_forward.3
= control target key start
LH: loop header
LB: loop body
LE: loop exit
PB: predicated region body
PF: predicated region fallthrough
CT: control target
= control target key end

     0   :  { %s351_s14 = smov 0   ;;  %s375_s0 = inlined_call_operand.vmem [shape: f32[6,1200], index: 0, kind: input, shape index: {}]   ;;  %s376_s1 = inlined_call_operand.vmem [shape: f32[6,1], index: 1, kind: input, shape index: {}]   ;;  %s377_s2 = inlined_call_operand.<no memory space> [shape: f32[1,1], index: 2, kind: input, shape index: {}]   ;;  %s378_s3 = inlined_call_operand.vmem [shape: f32[1,1200], index: 3, kind: output, shape index: {}]  }
   0x1   :  { %8 = sst [smem:[#allocation2]] %s377_s2 }
   0x2 LB: > { %s287_s15 = sadd.s32 4294967295, %s324_s14   ;;  %p291_p0 = scmp.ge.s32.totalorder %s324_s14, 1  ;;  %s324_s14 = sphi %s351_s14, %s14_s14  }
   0x3   : > { %p139_p1 = scmp.lt.s32.totalorder %s324_s14, 6 }
   0x5   : > { %p140_p2 = pnand %p291_p0, %p139_p1 }
   0x6   : > { %v175_v0 = vld [vmem:[%s376_s1] sm:$0x3f] (!%p140_p2)  ;;  %v326_v1 = vmov (!%p140_p2), 0   ;;  %s292_s2 = sshll.u32 (!%p140_p2), %s287_s15, 1  ;;  %vm183_vm0 = vcmask (!%p140_p2), 1045504   ;;  %s198_s22 = sld [smem:[#allocation2]] (!%p140_p2)  ;;  %v220_v32 = vlaneseq (!%p140_p2) }
   0x7   : > { %143 = sbr.rel (%p140_p2) target bundleno = 187 (0xbb), region = 32  ;;  %309 = vset.pattern.permute.xlu0 (!%p140_p2), %v326_v1  ;;  %p163_p3 = scmp.lt.s32.totalorder (!%p140_p2), %s292_s2, 9  ;;  %v327_v30 = vmov (!%p140_p2), 1966171168  }
   0x8   : > { %178 = vperm.xlu0 (!%p140_p2), %309, %v175_v0   ;;  %v218_v31 = vunpack.c.l.s4 (!%p140_p2), %v327_v30  ;;  %v221_v34 = vshrl.u32 (!%p140_p2), %v220_v32, 7  ;;  %vm234_vm1 = vcmp.lt.s32.totalorder (!%p140_p2), %v220_v32, 256 }
   0xa   : > { %v219_v33 = vunpack.c.0.s8 (!%p140_p2), %v218_v31 }
   0xc   : > { %v199_v19 = vstv (!%p140_p2), %s198_s22  ;;  %v222_v36 = vsub.s32 (!%p140_p2), %v219_v33, %v221_v34 }
   0xe   : > { %s380_s2 = smov (!%p163_p3, %s292_s2), 9 }
   0xf   : > { %s293_s18 = sshll.u32 %s380_s2, 3  ;;  %s171_s25 = scalar_lea.vmem %s378_s3, %s380_s2 }
  0x10   : > { %s166_s21 = scalar_lea.vmem %s375_s0, %s293_s18 }
  0x11   : > { %v173_v2 = vld [vmem:[%s166_s21] sm:$0x3f]  ;;  %v174_v3 = vld [vmem:[%s166_s21 + $0x8] sm:$0x3f] }
  0x87   : > { %v179_v4 = vpop.permute.xlu0 %178 }
  0x88   : > { %v181_v5 = vmul.f32 %v179_v4, %v173_v2  ;;  %v182_v6 = vmul.f32 %v179_v4, %v174_v3 }
  0x8a   : > { %v184_v7 = vsel %vm183_vm0, %v181_v5, 0.0  ;;  %v191_v8 = vsel %vm183_vm0, %v182_v6, 0.0 }
  0x8b   : > { %v185_v9 = vrot.slane %v184_v7, 4  ;;  %v192_v10 = vrot.slane %v191_v8, 4 }
  0x8d   : > { %v186_v11 = vadd.f32 %v185_v9, %v184_v7  ;;  %v193_v12 = vadd.f32 %v192_v10, %v191_v8 }
  0x8f   : > { %v187_v13 = vrot.slane %v186_v11, 2  ;;  %v194_v14 = vrot.slane %v193_v12, 2 }
  0x91   : > { %v188_v15 = vadd.f32 %v187_v13, %v186_v11  ;;  %v195_v16 = vadd.f32 %v194_v14, %v193_v12 }
  0x93   : > { %v189_v17 = vrot.slane %v188_v15, 1  ;;  %v196_v18 = vrot.slane %v195_v16, 1 }
  0x95   : > { %v190_v20 = vadd.f32 %v189_v17, %v188_v15  ;;  %v197_v21 = vadd.f32 %v196_v18, %v195_v16 }
  0x97   : > { %v200_v22 = vadd.f32 %v199_v19, %v190_v20  ;;  %v201_v23 = vadd.f32 %v199_v19, %v197_v21 }
  0x99   : > { %v295_v24 = vmul.f32 -1.442695, %v200_v22  ;;  %v296_v25 = vmul.f32 -1.442695, %v201_v23 }
  0x9b   : > { %310 = vpow2.f32 %v295_v24 }
  0x9c   : > { %312 = vpow2.f32 %v296_v25 }
  0xa5   : > { %v311_v26 = vpop.eup %310 }
  0xa6   : > { %v313_v27 = vpop.eup %312  ;;  %v208_v28 = vadd.f32 1.0, %v311_v26 }
  0xa7   : > { %v209_v29 = vadd.f32 1.0, %v313_v27 }
  0xa8   : > { %314 = vrcp.f32 %v208_v28 }
  0xa9   : > { %316 = vrcp.f32 %v209_v29 }
  0xb2   : > { %v315_v35 = vpop.eup %314 }
  0xb3   : > { %v317_v37 = vpop.eup %316 }
  0xb4   : > { %v216_v38 = vcombine.low %v315_v35, %v317_v37 }
  0xb6   : > { %v223_v39 = vrot.slane %v216_v38, %v222_v36 }
  0xb8   : > { %v230_v40 = vrot.slane %v223_v39, %v222_v36 }
  0xba   : > { %236 = vst.msk [vmem:[%s171_s25] sm:$0x3] %vm234_vm1, %v230_v40 }
  0xbb PF: > { %s14_s14 = sadd.s32 1, %s324_s14  }
  0xbc   : > { %p11_p4 = scmp.ge.s32.totalorder %s14_s14, 7  }
  0xbe   :  { %13 = sbr.rel (!%p11_p4) target bundleno = 2 (0x2), region = 62 }

// kernel: final_classifier_forward.2
= control target key start
LH: loop header
LB: loop body
LE: loop exit
PB: predicated region body
PF: predicated region fallthrough
CT: control target
= control target key end

     0   :  { %s2553_s18 = smov 0   ;;  %s2555_s19 = smov 0   ;;  %s3170_s0 = inlined_call_operand.vmem [shape: f32[1200,32], index: 0, kind: input, shape index: {}]   ;;  %s3171_s1 = inlined_call_operand.vmem [shape: f32[32,6], index: 1, kind: input, shape index: {}]   ;;  %s3172_s2 = inlined_call_operand.vmem [shape: f32[6,1], index: 2, kind: input, shape index: {}]   ;;  %s3173_s3 = inlined_call_operand.vmem [shape: f32[6,1200], index: 3, kind: output, shape index: {0}]   ;;  %s3174_s4 = inlined_call_operand.vmem [shape: f32[2,6,6], index: 4, kind: output, shape index: {1}]   ;;  %s3175_s5 = inlined_call_operand.vmem [shape: f32[2,6,1], index: 5, kind: output, shape index: {2}]  }
   0x1   :  { %s2557_s20 = smov 0   ;;  %s2559_s21 = smov 0  }
   0x2   :  { %s2561_s22 = smov 0  }
   0x3 LB: > { %s25_s23 = sadd.s32 1, %s2511_s20  ;;  %s28_s24 = sadd.s32 1, %s2515_s21  ;;  %s2519_s22 = sphi %s2561_s22, %s16_s22   ;;  %s2515_s21 = sphi %s2559_s21, %s3264_s21   ;;  %s2511_s20 = sphi %s2557_s20, %s3263_s20   ;;  %s2507_s19 = sphi %s2555_s19, %s3262_s19   ;;  %s2503_s18 = sphi %s2553_s18, %s3261_s18  }
   0x4   : > { %p26_p0 = scmp.ge.s32.totalorder %s25_s23, 3  ;;  %p2017_p1 = scmp.ge.s32.totalorder %s2519_s22, 1 }
   0x5   : > { %p237_p2 = scmp.lt.s32.totalorder %s2519_s22, 7 }
   0x6   : > { %s3266_s23 = smov (%p26_p0, %s25_s23), 0  ;;  %s3268_s24 = smov (!%p26_p0, %s28_s24), %s2515_s21 }
   0x7   : > { %p238_p3 = pnand %p2017_p1, %p237_p2  ;;  %p30_p4 = scmp.ge.s32.totalorder %s3268_s24, 2 }
   0x9   : > { %s3270_s24 = smov (%p30_p4, %s3268_s24), 0  ;;  %241 = sbr.rel (%p238_p3) target bundleno = 759 (0x2f7), region = 32 }
  0x10   : > { %s285_s25 = smul.u32 3, %s2507_s19  ;;  %p321_p5 = scmp.lt.s32.totalorder %s2507_s19, 1 }
  0x11   : > { %p2024_p9 = scmp.ne.s32.totalorder %s2503_s18, 0 }
  0x12   : > { %s2586_s26 = sadd.s32 %s2503_s18, %s285_s25  ;;  %s3272_s19 = smov (!%p321_p5, %s2507_s19), 1  ;;  %vm333_vm0 = vcmask (!%p2024_p9), 46080   ;;  %vm335_vm1 = vcmask (!%p2024_p9), 5120   ;;  %v2521_v0 = vmov (!%p2024_p9), 0.0  }
  0x13   : > { %p287_p6 = scmp.lt.s32.totalorder %s2586_s26, 4  ;;  %s2022_s28 = sshll.u32 %s3272_s19, 3 }
  0x14   : > { %s2593_s8 = scalar_lea.vmem %s3174_s4, %s2022_s28  ;;  %s2598_s11 = scalar_lea.vmem %s3175_s5, %s2022_s28 }
  0x15   : > { %s288_s27 = scalar_select %p287_p6, %s2586_s26, 4 }
  0x16   : > { %332 = sbr.rel (%p2024_p9) target bundleno = 29 (0x1d), region = 36  ;;  %334 = vst.msk [vmem:[%s2593_s8] sm:$0x3f] (!%p2024_p9), %vm333_vm0, %v2521_v0 }
  0x17   : > { %s2018_s29 = sshll.u32 %s288_s27, 5  ;;  %s2020_s30 = sshll.u32 %s288_s27, 1  ;;  %336 = vst.msk [vmem:[%s2598_s11] sm:$0x3f] (!%p2024_p9), %vm335_vm1, %v2521_v0 }
  0x18   : > { %p294_p7 = scmp.lt.s32.totalorder %s2018_s29, 149  ;;  %p312_p8 = scmp.lt.s32.totalorder %s2020_s30, 9 }
  0x1a   : > { %s3274_s29 = smov (!%p294_p7, %s2018_s29), 149  ;;  %s3276_s30 = smov (!%p312_p8, %s2020_s30), 9 }
  0x1b   : > { %s2019_s12 = sshll.u32 %s3274_s29, 3  ;;  %s2021_s16 = sshll.u32 %s3276_s30, 3 }
  0x1c   : > { %s2603_s15 = scalar_lea.vmem %s3170_s0, %s2019_s12  ;;  %s2608_s25 = scalar_lea.vmem %s3173_s3, %s2021_s16 }
  0x1d PF: > { %v369_v1 = vld [vmem:[%s3171_s1] sm:$0xff]  ;;  %vm411_vm2 = vcmask 261120   ;;  %v370_v2 = vld [vmem:[%s3171_s1 + $0x8] sm:$0xff]  ;;  %v355_v9 = vld [vmem:[%s2603_s15 + $0x90] sm:$0xff]  ;;  %s2025_s13 = sshll.u32 %s2586_s26, 8  ;;  %vm1862_vm5 = vcmask 1045504  }
  0x1e   : > { %379 = vxpose.xlu0.b32.start [1/4] (short) (narrow) %v369_v1, 8  ;;  %v353_v3 = vld [vmem:[%s2603_s15 + $0x80] sm:$0xff]  ;;  %v354_v4 = vld [vmem:[%s2603_s15 + $0x88] sm:$0xff]  ;;  %v356_v14 = vld [vmem:[%s2603_s15 + $0x98] sm:$0xff]  ;;  %v470_v18 = vsel %vm411_vm2, %v355_v9, 0  ;;  %vm1869_vm6 = vcmask 5120  }
  0x1f   : > { %v2622_v5 = vsel %vm411_vm2, %v353_v3, 0  ;;  %v2625_v6 = vsel %vm411_vm2, %v354_v4, 0  ;;  %v337_v7 = vld [vmem:[%s2603_s15] sm:$0xff]  ;;  %v338_v8 = vld [vmem:[%s2603_s15 + $0x8] sm:$0xff]  ;;  %v339_v15 = vld [vmem:[%s2603_s15 + $0x10] sm:$0xff]  ;;  %v473_v19 = vsel %vm411_vm2, %v356_v14, 0 }
  0x20   : > { %v560_v10 = vand.u32 4294901760, %v2622_v5  ;;  %v3179_v11 = vand.u32 4294901760, %v2625_v6  ;;  %v416_v12 = vsel %vm411_vm2, %v337_v7, 0  ;;  %v419_v13 = vsel %vm411_vm2, %v338_v8, 0  ;;  %v340_v20 = vld [vmem:[%s2603_s15 + $0x18] sm:$0xff]  ;;  %v357_v21 = vld [vmem:[%s2603_s15 + $0xa0] sm:$0xff] }
  0x21   : > { %v512_v16 = vand.u32 4294901760, %v416_v12  ;;  %v515_v17 = vand.u32 4294901760, %v419_v13  ;;  %v371_v22 = vld [vmem:[%s3171_s1 + $0x10] sm:$0xff]  ;;  %v566_v24 = vand.u32 4294901760, %v470_v18  ;;  %v569_v28 = vand.u32 4294901760, %v473_v19  ;;  %v358_v29 = vld [vmem:[%s2603_s15 + $0xa8] sm:$0xff] }
  0x22   : > { %380 = vxpose.xlu0.b32.cont [2/4] (short) (narrow) %v370_v2, 8  ;;  %v2647_v23 = vpack.c.bf16 %v3179_v11, %v560_v10  ;;  %v341_v30 = vld [vmem:[%s2603_s15 + $0x20] sm:$0xff]  ;;  %v342_v31 = vld [vmem:[%s2603_s15 + $0x28] sm:$0xff]  ;;  %v422_v33 = vsel %vm411_vm2, %v339_v15, 0  ;;  %v425_v34 = vsel %vm411_vm2, %v340_v20, 0  ;;  %v476_v35 = vsel %vm411_vm2, %v357_v21, 0 }
  0x23   : > { %v2649_v25 = vpack.c.bf16 %v515_v17, %v512_v16  ;;  %v2651_v26 = vsub.f32 %v416_v12, %v512_v16  ;;  %v2653_v27 = vsub.f32 %v419_v13, %v515_v17  ;;  %v2660_v32 = vsub.f32 %v470_v18, %v566_v24  ;;  %v359_v40 = vld [vmem:[%s2603_s15 + $0xb0] sm:$0xff]  ;;  %v360_v45 = vld [vmem:[%s2603_s15 + $0xb8] sm:$0xff]  ;;  %v361_v56 = vld [vmem:[%s2603_s15 + $0xc0] sm:$0xff] }
  0x24   : > { %3205 = vst [vmem:[#allocation2_spill] sm:$0xff] %v2647_v23  ;;  %2329 = vmatprep.subr.bf16.mxu0 %v2647_v23  ;;  %2233 = vmatprep.subr.bf16.mxu1 %v2647_v23  ;;  %v2667_v36 = vpack.c.bf16 %v569_v28, %v566_v24  ;;  %v2669_v37 = vsub.f32 %v473_v19, %v569_v28  ;;  %v518_v38 = vand.u32 4294901760, %v422_v33  ;;  %v521_v39 = vand.u32 4294901760, %v425_v34  ;;  %v372_v46 = vld [vmem:[%s3171_s1 + $0x18] sm:$0xff]  ;;  %v343_v54 = vld [vmem:[%s2603_s15 + $0x30] sm:$0xff]  ;;  %v362_v1 = vld [vmem:[%s2603_s15 + $0xc8] sm:$0xff] }
  0x25   : > { %3206 = vst [vmem:[#allocation3_spill] sm:$0xff] %v2649_v25  ;;  %2331 = vmatpush3.bf16.xpose.msra.mxu0 %v2649_v25  ;;  %2235 = vmatpush3.bf16.xpose.msra.mxu1 %v2649_v25  ;;  %v479_v41 = vsel %vm411_vm2, %v358_v29, 0  ;;  %v572_v42 = vand.u32 4294901760, %v476_v35  ;;  %v428_v43 = vsel %vm411_vm2, %v341_v30, 0  ;;  %v431_v44 = vsel %vm411_vm2, %v342_v31, 0  ;;  %v344_v55 = vld [vmem:[%s2603_s15 + $0x38] sm:$0xff] }
  0x26   : > { %3207 = vst [vmem:[#allocation4_spill] sm:$0xff] %v2667_v36  ;;  %381 = vxpose.xlu0.b32.cont [3/4] (short) (narrow) %v371_v22, 8  ;;  %2333 = vmatprep.subr.bf16.mxu0 %v2667_v36  ;;  %v2680_v47 = vsub.f32 %v422_v33, %v518_v38  ;;  %v2682_v48 = vsub.f32 %v425_v34, %v521_v39  ;;  %v575_v49 = vand.u32 4294901760, %v479_v41  ;;  %v524_v51 = vand.u32 4294901760, %v428_v43  ;;  %v345_v2 = vld [vmem:[%s2603_s15 + $0x40] sm:$0xff]  ;;  %v346_v3 = vld [vmem:[%s2603_s15 + $0x48] sm:$0xff] }
  0x27   : > { %2237 = vmatprep.subr.bf16.mxu1 %v2667_v36  ;;  %v2685_v50 = vsub.f32 %v476_v35, %v572_v42  ;;  %v527_v52 = vand.u32 4294901760, %v431_v44  ;;  %v482_v53 = vsel %vm411_vm2, %v359_v40, 0  ;;  %v2691_v57 = vpack.c.bf16 %v521_v39, %v518_v38  ;;  %v363_v15 = vld [vmem:[%s2603_s15 + $0xd0] sm:$0xff]  ;;  %v364_v20 = vld [vmem:[%s2603_s15 + $0xd8] sm:$0xff]  ;;  %v365_v35 = vld [vmem:[%s2603_s15 + $0xe0] sm:$0xff] }
  0x28   : > { %v2693_v58 = vsub.f32 %v479_v41, %v575_v49  ;;  %v485_v59 = vsel %vm411_vm2, %v360_v45, 0  ;;  %v578_v60 = vand.u32 4294901760, %v482_v53  ;;  %v2696_v61 = vpack.c.bf16 %v575_v49, %v572_v42  ;;  %v347_v33 = vld [vmem:[%s2603_s15 + $0x50] sm:$0xff]  ;;  %v348_v34 = vld [vmem:[%s2603_s15 + $0x58] sm:$0xff]  ;;  %v349_v49 = vld [vmem:[%s2603_s15 + $0x60] sm:$0xff] }
  0x29   : > { %3208 = vst [vmem:[#allocation5_spill] sm:$0xff] %v2691_v57  ;;  %v2698_v62 = vsub.f32 %v428_v43, %v524_v51  ;;  %v2700_v63 = vsub.f32 %v431_v44, %v527_v52  ;;  %v581_v0 = vand.u32 4294901760, %v485_v59  ;;  %v2708_v7 = vsel %vm411_vm2, %v343_v54, 0 }
  0x2a   : > { %382 = vxpose.xlu0.b32.end [4/4] (short) (narrow) %v372_v46, 8  ;;  %3209 = vst [vmem:[#allocation6_spill] sm:$0xff] %v2696_v61  ;;  %v2705_v4 = vsub.f32 %v482_v53, %v578_v60  ;;  %v2711_v8 = vsel %vm411_vm2, %v344_v55, 0  ;;  %v2714_v9 = vsel %vm411_vm2, %v361_v56, 0  ;;  %v530_v13 = vand.u32 4294901760, %v2708_v7  ;;  %v366_v46 = vld [vmem:[%s2603_s15 + $0xe8] sm:$0xff] }
  0x2b   : > { %v2716_v12 = vsub.f32 %v485_v59, %v581_v0  ;;  %v533_v14 = vand.u32 4294901760, %v2711_v8  ;;  %v2724_v16 = vsel %vm411_vm2, %v362_v1, 0  ;;  %v584_v17 = vand.u32 4294901760, %v2714_v9 }
  0x2c   : > { %v2728_v18 = vsel %vm411_vm2, %v345_v2, 0  ;;  %v2731_v19 = vsel %vm411_vm2, %v346_v3, 0  ;;  %v2739_v21 = vsub.f32 %v2708_v7, %v530_v13  ;;  %v587_v24 = vand.u32 4294901760, %v2724_v16 }
  0x2d   : > { %2335 = vmatpush3.bf16.xpose.msra.mxu0 %v2691_v57  ;;  %2239 = vmatpush3.bf16.xpose.msra.mxu1 %v2691_v57  ;;  %v2744_v22 = vsub.f32 %v2711_v8, %v533_v14  ;;  %v2750_v28 = vsub.f32 %v2714_v9, %v584_v17  ;;  %v3177_v29 = vand.u32 4294901760, %v2728_v18  ;;  %v3176_v30 = vand.u32 4294901760, %v2731_v19 }
  0x2e   : > { %2337 = vmatprep.subr.bf16.mxu0 %v2696_v61  ;;  %2241 = vmatprep.subr.bf16.mxu1 %v2696_v61  ;;  %v2755_v31 = vsel %vm411_vm2, %v363_v15, 0  ;;  %v2760_v38 = vpack.c.bf16 %v527_v52, %v524_v51  ;;  %v2763_v39 = vsub.f32 %v2724_v16, %v587_v24  ;;  %v497_v40 = vsel %vm411_vm2, %v364_v20, 0  ;;  %v350_v51 = vld [vmem:[%s2603_s15 + $0x68] sm:$0xff]  ;;  %v368_v16 = vld [vmem:[%s2603_s15 + $0xf8] sm:$0xff] }
  0x2f   : > { %v590_v41 = vand.u32 4294901760, %v2755_v31  ;;  %v2767_v42 = vpack.c.bf16 %v581_v0, %v578_v60  ;;  %v2772_v43 = vsub.f32 %v2728_v18, %v3177_v29  ;;  %v2777_v44 = vsub.f32 %v2731_v19, %v3176_v30  ;;  %v367_v0 = vld [vmem:[%s2603_s15 + $0xf0] sm:$0xff] }
  0x30   : > { %3210 = vst [vmem:[#allocation7_spill] sm:$0xff] %v2760_v38  ;;  %v593_v45 = vand.u32 4294901760, %v497_v40  ;;  %v446_v53 = vsel %vm411_vm2, %v347_v33, 0  ;;  %v449_v54 = vsel %vm411_vm2, %v348_v34, 0  ;;  %v2788_v55 = vsel %vm411_vm2, %v365_v35, 0 }
  0x31   : > { %3211 = vst [vmem:[#allocation8_spill] sm:$0xff] %v2767_v42  ;;  %v2783_v52 = vsub.f32 %v2755_v31, %v590_v41  ;;  %v542_v59 = vand.u32 4294901760, %v446_v53  ;;  %v545_v60 = vand.u32 4294901760, %v449_v54  ;;  %v503_v1 = vsel %vm411_vm2, %v366_v46, 0 }
  0x32   : > { %v2790_v56 = vsub.f32 %v497_v40, %v593_v45  ;;  %v596_v2 = vand.u32 4294901760, %v2788_v55  ;;  %v2796_v3 = vsel %vm411_vm2, %v349_v49, 0  ;;  %v2799_v15 = vsel %vm411_vm2, %v350_v51, 0  ;;  %v351_v49 = vld [vmem:[%s2603_s15 + $0x70] sm:$0xff]  ;;  %v352_v51 = vld [vmem:[%s2603_s15 + $0x78] sm:$0xff] }
  0x33   : > { %v2804_v20 = vsub.f32 %v446_v53, %v542_v59  ;;  %v2806_v31 = vsub.f32 %v449_v54, %v545_v60  ;;  %v599_v33 = vand.u32 4294901760, %v503_v1  ;;  %v3178_v35 = vand.u32 4294901760, %v2796_v3 }
  0x34   : > { %v2811_v34 = vsub.f32 %v2788_v55, %v596_v2  ;;  %v3180_v40 = vand.u32 4294901760, %v2799_v15  ;;  %v2816_v46 = vsel %vm411_vm2, %v367_v0, 0  ;;  %v2823_v54 = vsel %vm411_vm2, %v368_v16, 0 }
  0x35   : > { %2339 = vmatpush3.bf16.xpose.msra.mxu0 %v2760_v38  ;;  %2243 = vmatpush3.bf16.xpose.msra.mxu1 %v2760_v38  ;;  %v2820_v53 = vsub.f32 %v503_v1, %v599_v33  ;;  %v3182_v30 = vand.u32 4294901760, %v2816_v46  ;;  %v2829_v55 = vsub.f32 %v2796_v3, %v3178_v35  ;;  %v3181_v0 = vand.u32 4294901760, %v2823_v54 }
  0x36   : > { %2341 = vmatprep.subr.bf16.mxu0 %v2767_v42  ;;  %2245 = vmatprep.subr.bf16.mxu1 %v2767_v42  ;;  %v2834_v29 = vsub.f32 %v2799_v15, %v3180_v40  ;;  %v2841_v1 = vpack.c.bf16 %v533_v14, %v530_v13  ;;  %v2849_v35 = vsel %vm411_vm2, %v351_v49, 0  ;;  %v2852_v11 = vsel %vm411_vm2, %v352_v51, 0 }
  0x37   : > { %3212 = vst [vmem:[#allocation9_spill] sm:$0xff] %v2820_v53  ;;  %3213 = vst [vmem:[#allocation10_spill] sm:$0xff] %v2829_v55  ;;  %v2846_v16 = vsub.f32 %v2816_v46, %v3182_v30  ;;  %v2856_v40 = vpack.c.bf16 %v587_v24, %v584_v17  ;;  %v2861_v7 = vsub.f32 %v2823_v54, %v3181_v0  ;;  %v3183_v8 = vand.u32 4294901760, %v2849_v35 }
  0x38   : > { %3214 = vst [vmem:[#allocation11_spill] sm:$0xff] %v2834_v29  ;;  %3215 = vst [vmem:[#allocation12_spill] sm:$0xff] %v2841_v1  ;;  %v3184_v13 = vand.u32 4294901760, %v2852_v11  ;;  %v2868_v14 = vsub.f32 %v2622_v5, %v560_v10  ;;  %v622_v49 = vand.u32 4294901760, %v2651_v26  ;;  %v629_v9 = vand.u32 4294901760, %v2653_v27 }
  0x39   : > { %3216 = vst [vmem:[#allocation13_spill] sm:$0xff] %v2846_v16  ;;  %3217 = vst [vmem:[#allocation14_spill] sm:$0xff] %v2856_v40  ;;  %v3219_v17 = vand.u32 4294901760, %v2625_v6  ;;  %v2880_v51 = vsub.f32 %v2849_v35, %v3183_v8  ;;  %v748_v5 = vand.u32 4294901760, %v2660_v32  ;;  %v3222_v10 = vand.u32 4294901760, %v2728_v18 }
  0x3a   : > { %3218 = vst [vmem:[#allocation15_spill] sm:$0xff] %v2861_v7  ;;  %v2885_v0 = vsub.f32 %v2852_v11, %v3184_v13  ;;  %v2896_v30 = vpack.c.bf16 %v593_v45, %v590_v41  ;;  %v2898_v8 = vpack.c.bf16 %v629_v9, %v622_v49  ;;  %v623_v13 = vsub.f32 %v2651_v26, %v622_v49 }
  0x3b   : > { %v2875_v24 = vsub.f32 %v2625_v6, %v3219_v17  ;;  %3220 = vst [vmem:[#allocation16_spill] sm:$0xff] %v2880_v51  ;;  %v3223_v6 = vand.u32 4294901760, %v2731_v19  ;;  %v630_v42 = vsub.f32 %v2653_v27, %v629_v9  ;;  %v636_v18 = vand.u32 4294901760, %v2680_v47 }
  0x3c   : > { %3221 = vst [vmem:[#allocation17_spill] sm:$0xff] %v2885_v0  ;;  %3225 = vst [vmem:[#allocation19_spill] sm:$0xff] %v2896_v30  ;;  %v2906_v38 = vpack.c.bf16 %v545_v60, %v542_v59  ;;  %v643_v19 = vand.u32 4294901760, %v2682_v48  ;;  %v749_v41 = vsub.f32 %v2660_v32, %v748_v5  ;;  %v762_v45 = vand.u32 4294901760, %v2685_v50 }
  0x3d   : > { %2343 = vmatpush3.bf16.xpose.msra.mxu0 %v2841_v1  ;;  %2247 = vmatpush3.bf16.xpose.msra.mxu1 %v2841_v1  ;;  %v2894_v17 = vpack.c.bf16 %v3223_v6, %v3222_v10  ;;  %v755_v1 = vand.u32 4294901760, %v2669_v37  ;;  %v624_v10 = vand.u32 4294901760, %v623_v13  ;;  %v631_v6 = vand.u32 4294901760, %v630_v42 }
  0x3e   : > { %2345 = vmatprep.subr.bf16.mxu0 %v2856_v40  ;;  %2249 = vmatprep.subr.bf16.mxu1 %v2856_v40  ;;  %3226 = vst [vmem:[#allocation20_spill] sm:$0xff] %v2906_v38  ;;  %v2914_v40 = vpack.c.bf16 %v599_v33, %v596_v2  ;;  %v2916_v9 = vpack.c.bf16 %v643_v19, %v636_v18  ;;  %v750_v57 = vand.u32 4294901760, %v749_v41  ;;  %v769_v23 = vand.u32 4294901760, %v2693_v58 }
  0x3f   : > { %3224 = vst [vmem:[#allocation18_spill] sm:$0xff] %v2894_v17  ;;  %v2911_v61 = vpack.c.bf16 %v755_v1, %v748_v5  ;;  %v756_v49 = vsub.f32 %v2669_v37, %v755_v1  ;;  %v637_v59 = vsub.f32 %v2680_v47, %v636_v18  ;;  %v2919_v60 = vpack.c.bf16 %v631_v6, %v624_v10 }
  0x40   : > { %3227 = vst [vmem:[#allocation21_spill] sm:$0xff] %v2914_v40  ;;  %v644_v25 = vsub.f32 %v2682_v48, %v643_v19  ;;  %v650_v42 = vand.u32 4294901760, %v2698_v62  ;;  %v657_v5 = vand.u32 4294901760, %v2700_v63  ;;  %v763_v2 = vsub.f32 %v2685_v50, %v762_v45 }
  0x41   : > { %v757_v36 = vand.u32 4294901760, %v756_v49  ;;  %v638_v13 = vand.u32 4294901760, %v637_v59  ;;  %v2928_v41 = vpack.c.bf16 %v769_v23, %v762_v45  ;;  %v770_v18 = vsub.f32 %v2693_v58, %v769_v23 }
  0x42   : > { %v645_v1 = vand.u32 4294901760, %v644_v25  ;;  %v2933_v19 = vpack.c.bf16 %v657_v5, %v650_v42  ;;  %v764_v10 = vand.u32 4294901760, %v763_v2  ;;  %v651_v6 = vsub.f32 %v2698_v62, %v650_v42 }
  0x43   : > { %v2926_v33 = vpack.c.bf16 %v757_v36, %v750_v57  ;;  %v658_v49 = vsub.f32 %v2700_v63, %v657_v5  ;;  %v771_v36 = vand.u32 4294901760, %v770_v18  ;;  %v776_v23 = vand.u32 4294901760, %v2705_v4 }
  0x44   : > { %v2939_v25 = vpack.c.bf16 %v645_v1, %v638_v13  ;;  %v783_v57 = vand.u32 4294901760, %v2716_v12  ;;  %v652_v45 = vand.u32 4294901760, %v651_v6  ;;  %v671_v2 = vand.u32 4294901760, %v2744_v22 }
  0x45   : > { %2347 = vmatpush3.bf16.xpose.msra.mxu0 %v2894_v17  ;;  %2251 = vmatpush3.bf16.xpose.msra.mxu1 %v2894_v17  ;;  %v659_v59 = vand.u32 4294901760, %v658_v49  ;;  %v664_v17 = vand.u32 4294901760, %v2739_v21  ;;  %v2945_v42 = vpack.c.bf16 %v771_v36, %v764_v10  ;;  %v777_v0 = vsub.f32 %v2705_v4, %v776_v23 }
  0x46   : > { %2349 = vmatprep.subr.bf16.mxu0 %v2896_v30  ;;  %2253 = vmatprep.subr.bf16.mxu1 %v2896_v30  ;;  %v2947_v5 = vpack.c.bf16 %v783_v57, %v776_v23  ;;  %v784_v13 = vsub.f32 %v2716_v12, %v783_v57  ;;  %v672_v6 = vsub.f32 %v2744_v22, %v671_v2  ;;  %v790_v7 = vand.u32 4294901760, %v2750_v28 }
  0x47   : > { %v2951_v1 = vpack.c.bf16 %v659_v59, %v652_v45  ;;  %v2953_v18 = vpack.c.bf16 %v671_v2, %v664_v17  ;;  %v665_v30 = vsub.f32 %v2739_v21, %v664_v17  ;;  %v778_v49 = vand.u32 4294901760, %v777_v0 }
  0x48   : > { %v785_v51 = vand.u32 4294901760, %v784_v13  ;;  %v797_v10 = vand.u32 4294901760, %v2763_v39  ;;  %v673_v16 = vand.u32 4294901760, %v672_v6  ;;  %v678_v23 = vand.u32 4294901760, %v2772_v43 }
  0x49   : > { %v666_v36 = vand.u32 4294901760, %v665_v30  ;;  %v685_v57 = vand.u32 4294901760, %v2777_v44  ;;  %v791_v17 = vsub.f32 %v2750_v28, %v790_v7  ;;  %v734_v0 = vand.u32 4294901760, %v2868_v14 }
  0x4a   : > { %v2961_v45 = vpack.c.bf16 %v785_v51, %v778_v49  ;;  %v2963_v59 = vpack.c.bf16 %v797_v10, %v790_v7  ;;  %v798_v2 = vsub.f32 %v2763_v39, %v797_v10  ;;  %v679_v6 = vsub.f32 %v2772_v43, %v678_v23 }
  0x4b   : > { %v2970_v30 = vpack.c.bf16 %v673_v16, %v666_v36  ;;  %v2972_v13 = vpack.c.bf16 %v685_v57, %v678_v23  ;;  %v741_v7 = vand.u32 4294901760, %v2875_v24  ;;  %v792_v51 = vand.u32 4294901760, %v791_v17 }
  0x4c   : > { %v799_v49 = vand.u32 4294901760, %v798_v2  ;;  %v686_v10 = vsub.f32 %v2777_v44, %v685_v57  ;;  %v680_v29 = vand.u32 4294901760, %v679_v6  ;;  %v3229_v16 = vand.u32 4294901760, %v2796_v3 }
  0x4d   : > { %2351 = vmatpush3.bf16.xpose.msra.mxu0 %v2906_v38  ;;  %2255 = vmatpush3.bf16.xpose.msra.mxu1 %v2906_v38  ;;  %3228 = vst [vmem:[#allocation22_spill] sm:$0xff] %v2972_v13  ;;  %v3230_v36 = vand.u32 4294901760, %v2799_v15  ;;  %v3231_v23 = vand.u32 4294901760, %v2816_v46  ;;  %v735_v17 = vsub.f32 %v2868_v14, %v734_v0  ;;  %v742_v57 = vsub.f32 %v2875_v24, %v741_v7 }
  0x4e   : > { %2353 = vmatprep.subr.bf16.mxu0 %v2914_v40  ;;  %2257 = vmatprep.subr.bf16.mxu1 %v2914_v40  ;;  %v2979_v38 = vpack.c.bf16 %v799_v49, %v792_v51  ;;  %v687_v55 = vand.u32 4294901760, %v686_v10  ;;  %v3232_v40 = vand.u32 4294901760, %v2823_v54  ;;  %v3233_v46 = vand.u32 4294901760, %v2849_v35  ;;  %v3242_v10 = vld [vmem:[#allocation17_spill] sm:$0xff] }
  0x4f   : > { %v2985_v13 = vpack.c.bf16 %v3230_v36, %v3229_v16  ;;  %v736_v3 = vand.u32 4294901760, %v735_v17  ;;  %v743_v15 = vand.u32 4294901760, %v742_v57  ;;  %v2360_v6 = vpack.c.bf16 %v741_v7, %v734_v0  ;;  %v3239_v36 = vld [vmem:[#allocation13_spill] sm:$0xff] }
  0x50   : > { %v2991_v53 = vpack.c.bf16 %v3232_v40, %v3231_v23  ;;  %v2995_v2 = vpack.c.bf16 %v687_v55, %v680_v29  ;;  %v3234_v40 = vand.u32 4294901760, %v2852_v11  ;;  %v2296_v29 = vpack.c.bf16 %v2875_v24, %v2868_v14  ;;  %v3246_v14 = vld [vmem:[#allocation5_spill] sm:$0xff]  ;;  %v3247_v24 = vld [vmem:[#allocation6_spill] sm:$0xff] }
  0x51   : > { %v2264_v51 = vpack.c.bf16 %v743_v15, %v736_v3  ;;  %v2298_v55 = vpack.c.bf16 %v2653_v27, %v2651_v26  ;;  %v2300_v35 = vpack.c.bf16 %v2669_v37, %v2660_v32  ;;  %v2302_v11 = vpack.c.bf16 %v2682_v48, %v2680_v47  ;;  %v3248_v26 = vld [vmem:[#allocation7_spill] sm:$0xff]  ;;  %v3249_v27 = vld [vmem:[#allocation8_spill] sm:$0xff]  ;;  %v3253_v47 = vld [vmem:[#allocation14_spill] sm:$0xff] }
  0x52   : > { %v3005_v54 = vpack.c.bf16 %v3234_v40, %v3233_v46  ;;  %v2304_v0 = vpack.c.bf16 %v2693_v58, %v2685_v50  ;;  %v727_v49 = vand.u32 4294901760, %v3242_v10  ;;  %v3250_v32 = vpack.c.bf16 %v2700_v63, %v2698_v62  ;;  %v3256_v58 = vld [vmem:[#allocation18_spill] sm:$0xff]  ;;  %v3257_v62 = vld [vmem:[#allocation19_spill] sm:$0xff] }
  0x53   : > { %v3251_v37 = vpack.c.bf16 %v2716_v12, %v2705_v4  ;;  %v3254_v48 = vpack.c.bf16 %v2744_v22, %v2739_v21  ;;  %v3255_v50 = vpack.c.bf16 %v2763_v39, %v2750_v28  ;;  %v2316_v63 = vpack.c.bf16 %v2790_v56, %v2783_v52  ;;  %v3259_v12 = vld [vmem:[#allocation20_spill] sm:$0xff]  ;;  %v3260_v22 = vld [vmem:[#allocation21_spill] sm:$0xff] }
  0x54   : > { %v3258_v4 = vpack.c.bf16 %v2777_v44, %v2772_v43  ;;  %v2318_v21 = vpack.c.bf16 %v2806_v31, %v2804_v20  ;;  %vm1859_vm7 = vcmask 46080  }
  0x55   : > { %2355 = vmatpush3.bf16.xpose.msra.mxu0 %v2985_v13  ;;  %2259 = vmatpush3.bf16.xpose.msra.mxu1 %v2985_v13 }
  0x56   : > { %2357 = vmatprep.subr.bf16.mxu0 %v2991_v53  ;;  %2261 = vmatprep.subr.bf16.mxu1 %v2991_v53 }
  0x5d   : > { %2359 = vmatpush3.bf16.xpose.msra.mxu0 %v3005_v54  ;;  %2263 = vmatpush3.bf16.xpose.msra.mxu1 %v3005_v54 }
  0x5e   : > { %2361 = vmatprep.subr.bf16.mxu0 %v2360_v6  ;;  %2265 = vmatprep.subr.bf16.mxu1 %v2264_v51  ;;  %v373_v6 = vld [vmem:[%s3172_s2] sm:$0x3f]  ;;  %v2522_v51 = vmov 0  }
  0x5f   : > { %2479 = vset.pattern.permute.xlu1 %v2522_v51  ;;  %2480 = vset.pattern.permute.xlu0 %v2522_v51  ;;  %v3237_v51 = vld [vmem:[#allocation10_spill] sm:$0xff] }
  0x60   : > { %376 = vperm.xlu1 %2479, %v373_v6  }
  0x9e   : > { %v395_v23 = vpop.trf.xlu0 }
  0x9f   : > { %v413_v17 = vsel %vm411_vm2, %v395_v23, 0 }
  0xa0   : > { %v3030_v57 = vand.u32 4294901760, %v413_v17 }
  0xa2   : > { %v3033_v3 = vsub.f32 %v413_v17, %v3030_v57 }
  0xa4   : > { %v610_v15 = vand.u32 4294901760, %v3033_v3 }
  0xa6   : > { %2162 = vmatprep.mubr.f32.mxu0 %v610_v15  ;;  %v611_v46 = vsub.f32 %v3033_v3, %v610_v15 }
  0xa7   : > { %2163 = vmatmul.mubr.f32.vlgmr.msra.gmra.mrb[0].mxu0 %v610_v15 }
  0xa8   : > { %2363 = vmatpush3.bf16.xpose.msra.mxu0 %v2898_v8  ;;  %2196 = vmatprep.mubr.f32.mxu0 %v3030_v57  ;;  %v612_v40 = vand.u32 4294901760, %v611_v46  ;;  %v811_v8 = vand.u32 4294901760, %v2790_v56 }
  0xa9   : > { %2365 = vmatprep.subr.bf16.mxu0 %v2911_v61  ;;  %v804_v61 = vand.u32 4294901760, %v2783_v52 }
  0xaa   : > { %2060 = vmatprep.mubr.f32.mxu1 %v612_v40 }
  0xab   : > { %2061 = vmatmul.mubr.f32.vlgmr.msra.gmra.mrb[0].mxu1 %v612_v40 }
  0xac   : > { %2267 = vmatpush3.bf16.xpose.msra.mxu1 %v2919_v60  ;;  %2094 = vmatprep.mubr.f32.mxu1 %v3030_v57  ;;  %v812_v60 = vsub.f32 %v2790_v56, %v811_v8 }
  0xad   : > { %2269 = vmatprep.subr.bf16.mxu1 %v2926_v33  ;;  %v692_v33 = vand.u32 4294901760, %v2804_v20 }
  0xb0   : > { %2367 = vmatpush3.bf16.xpose.msra.mxu0 %v2916_v9  ;;  %v805_v9 = vsub.f32 %v2783_v52, %v804_v61  ;;  %v1371_v52 = vlaneseq }
  0xb1   : > { %2369 = vmatprep.subr.bf16.mxu0 %v2928_v41  ;;  %v2380_v41 = vpack.c.bf16 %v811_v8, %v804_v61  ;;  %v706_v61 = vand.u32 4294901760, %v3237_v51  ;;  %v3238_v8 = vld [vmem:[#allocation11_spill] sm:$0xff] }
  0xb2   : > { %v2322_v39 = vpack.c.bf16 %v3238_v8, %v3237_v51  ;;  %v1372_v56 = vand.u32 127, %v1371_v52 }
  0xb4   : > { %2271 = vmatpush3.bf16.xpose.msra.mxu1 %v2939_v25  ;;  %v806_v25 = vand.u32 4294901760, %v805_v9  ;;  %v713_v9 = vand.u32 4294901760, %v3238_v8 }
  0xb5   : > { %2273 = vmatprep.subr.bf16.mxu1 %v2945_v42  ;;  %v813_v42 = vand.u32 4294901760, %v812_v60 }
  0xb7   : > { %v2284_v17 = vpack.c.bf16 %v813_v42, %v806_v25  ;;  %v3240_v25 = vld [vmem:[#allocation15_spill] sm:$0xff] }
  0xb8   : > { %2371 = vmatpush3.bf16.xpose.msra.mxu0 %v2933_v19  ;;  %v699_v19 = vand.u32 4294901760, %v2806_v31  ;;  %v839_v42 = vand.u32 4294901760, %v3240_v25  ;;  %v2324_v43 = vpack.c.bf16 %v3240_v25, %v3239_v36 }
  0xb9   : > { %2373 = vmatprep.subr.bf16.mxu0 %v2947_v5  ;;  %v818_v5 = vand.u32 4294901760, %v2811_v34 }
  0xba   : > { %v700_v23 = vsub.f32 %v2806_v31, %v699_v19  ;;  %v2382_v46 = vpack.c.bf16 %v699_v19, %v692_v33  ;;  %v714_v19 = vsub.f32 %v3238_v8, %v713_v9  ;;  %v1373_v31 = vadd.s32 128, %v1372_v56 }
  0xbc   : > { %2275 = vmatpush3.bf16.xpose.msra.mxu1 %v2951_v1  ;;  %v3235_v1 = vld [vmem:[#allocation9_spill] sm:$0xff]  ;;  %v701_v40 = vand.u32 4294901760, %v700_v23 }
  0xbd   : > { %2277 = vmatprep.subr.bf16.mxu1 %v2961_v45  ;;  %v693_v45 = vsub.f32 %v2804_v20, %v692_v33  ;;  %v707_v33 = vsub.f32 %v3237_v51, %v706_v61  ;;  %v2320_v28 = vpack.c.bf16 %v3235_v1, %v2811_v34  ;;  %v1374_v20 = vstv %s2025_s13 }
  0xbf   : > { %v708_v23 = vand.u32 4294901760, %v707_v33 }
  0xc0   : > { %2375 = vmatpush3.bf16.xpose.msra.mxu0 %v2953_v18  ;;  %v825_v18 = vand.u32 4294901760, %v3235_v1 }
  0xc1   : > { %2377 = vmatprep.subr.bf16.mxu0 %v2963_v59  ;;  %v3236_v59 = vld [vmem:[#allocation22_spill] sm:$0xff] }
  0xc2   : > { %v826_v15 = vsub.f32 %v3235_v1, %v825_v18  ;;  %v2384_v6 = vpack.c.bf16 %v825_v18, %v818_v5  ;;  %v840_v18 = vsub.f32 %v3240_v25, %v839_v42 }
  0xc4   : > { %2279 = vmatpush3.bf16.xpose.msra.mxu1 %v2970_v30  ;;  %v819_v30 = vsub.f32 %v2811_v34, %v818_v5 }
  0xc5   : > { %2281 = vmatprep.subr.bf16.mxu1 %v2979_v38  ;;  %v694_v38 = vand.u32 4294901760, %v693_v45  ;;  %v2386_v45 = vpack.c.bf16 %v713_v9, %v706_v61 }
  0xc6   : > { %v820_v60 = vand.u32 4294901760, %v819_v30  ;;  %v3241_v30 = vld [vmem:[#allocation16_spill] sm:$0xff] }
  0xc7   : > { %v2286_v16 = vpack.c.bf16 %v701_v40, %v694_v38  ;;  %v841_v40 = vand.u32 4294901760, %v840_v18  ;;  %v2326_v44 = vpack.c.bf16 %v3242_v10, %v3241_v30 }
  0xc8   : > { %2379 = vmatpush3.bf16.xpose.msra.mxu0 %v3236_v59  ;;  %v827_v59 = vand.u32 4294901760, %v826_v15  ;;  %v720_v15 = vand.u32 4294901760, %v3241_v30 }
  0xc9   : > { %2381 = vmatprep.subr.bf16.mxu0 %v2380_v41  ;;  %v832_v41 = vand.u32 4294901760, %v3239_v36 }
  0xcb   : > { %v833_v5 = vsub.f32 %v3239_v36, %v832_v41 }
  0xcc   : > { %2283 = vmatpush3.bf16.xpose.msra.mxu1 %v2995_v2  ;;  %v2288_v2 = vpack.c.bf16 %v827_v59, %v820_v60  ;;  %v728_v60 = vsub.f32 %v3242_v10, %v727_v49 }
  0xcd   : > { %2285 = vmatprep.subr.bf16.mxu1 %v2284_v17  ;;  %v715_v17 = vand.u32 4294901760, %v714_v19  ;;  %v834_v38 = vand.u32 4294901760, %v833_v5  ;;  %v3243_v19 = vld [vmem:[#allocation2_spill] sm:$0xff] }
  0xce   : > { %v729_v9 = vand.u32 4294901760, %v728_v60 }
  0xcf   : > { %v2290_v7 = vpack.c.bf16 %v715_v17, %v708_v23  ;;  %v2292_v59 = vpack.c.bf16 %v841_v40, %v834_v38 }
  0xd0   : > { %2383 = vmatpush3.bf16.xpose.msra.mxu0 %v2382_v46  ;;  %v2388_v46 = vpack.c.bf16 %v839_v42, %v832_v41  ;;  %v3244_v41 = vld [vmem:[#allocation3_spill] sm:$0xff] }
  0xd1   : > { %2385 = vmatprep.subr.bf16.mxu0 %v2384_v6  ;;  %v721_v6 = vsub.f32 %v3241_v30, %v720_v15 }
  0xd3   : > { %v722_v61 = vand.u32 4294901760, %v721_v6 }
  0xd4   : > { %2287 = vmatpush3.bf16.xpose.msra.mxu1 %v2286_v16  ;;  %v2390_v16 = vpack.c.bf16 %v727_v49, %v720_v15 }
  0xd5   : > { %2289 = vmatprep.subr.bf16.mxu1 %v2288_v2  ;;  %v2294_v33 = vpack.c.bf16 %v729_v9, %v722_v61 }
  0xd8   : > { %2387 = vmatpush3.bf16.xpose.msra.mxu0 %v2386_v45 }
  0xd9   : > { %2389 = vmatprep.subr.bf16.mxu0 %v2388_v46  ;;  %v1861_v46 = vld [vmem:[%s2598_s11] sm:$0x3f] }
  0xdc   : > { %2291 = vmatpush3.bf16.xpose.msra.mxu1 %v2290_v7  ;;  %v3245_v7 = vld [vmem:[#allocation4_spill] sm:$0xff] }
  0xdd   : > { %2293 = vmatprep.subr.bf16.mxu1 %v2292_v59 }
  0xe0   : > { %2391 = vmatpush3.bf16.xpose.msra.mxu0 %v2390_v16 }
  0xe1   : > { %2393 = vmatprep.subr.bf16.mxu0 %v3243_v19 }
  0xe4   : > { %2295 = vmatpush3.bf16.xpose.msra.mxu1 %v2294_v33 }
  0xe5   : > { %2297 = vmatprep.subr.bf16.mxu1 %v2296_v29  ;;  %v3252_v29 = vld [vmem:[#allocation12_spill] sm:$0xff] }
  0xe7   : > { %2197 = vmatmul.mubr.f32.vlgmr.msra.gmra.mrb[0].mxu0 %v3030_v57 }
  0xe8   : > { %2395 = vmatpush3.bf16.xpose.msra.mxu0 %v3244_v41  ;;  %2230 = vmatprep.mubr.f32.mxu0 %v3030_v57 }
  0xe9   : > { %2397 = vmatprep.subr.bf16.mxu0 %v3245_v7 }
  0xeb   : > { %2095 = vmatmul.mubr.f32.vlgmr.msra.gmra.mrb[0].mxu1 %v3030_v57 }
  0xec   : > { %2299 = vmatpush3.bf16.xpose.msra.mxu1 %v2298_v55  ;;  %2128 = vmatprep.mubr.f32.mxu1 %v3033_v3  ;;  %v1375_v55 = vadd.s32 %v1374_v20, %v1372_v56 }
  0xed   : > { %2301 = vmatprep.subr.bf16.mxu1 %v2300_v35 }
  0xee   : > { %vm1377_vm3 = vcmp.lt.s32.totalorder %v1375_v55, 1200 }
  0xf0   : > { %2399 = vmatpush3.bf16.xpose.msra.mxu0 %v3246_v14 }
  0xf1   : > { %2401 = vmatprep.subr.bf16.mxu0 %v3247_v24 }
  0xf4   : > { %2303 = vmatpush3.bf16.xpose.msra.mxu1 %v2302_v11 }
  0xf5   : > { %2305 = vmatprep.subr.bf16.mxu1 %v2304_v0 }
  0xf8   : > { %2403 = vmatpush3.bf16.xpose.msra.mxu0 %v3248_v26 }
  0xf9   : > { %2405 = vmatprep.subr.bf16.mxu0 %v3249_v27 }
  0xfc   : > { %2307 = vmatpush3.bf16.xpose.msra.mxu1 %v3250_v32 }
  0xfd   : > { %2309 = vmatprep.subr.bf16.mxu1 %v3251_v37 }
 0x100   : > { %2407 = vmatpush3.bf16.xpose.msra.mxu0 %v3252_v29  ;;  %v1385_v29 = vld [vmem:[%s2593_s8] sm:$0x3f] }
 0x101   : > { %2409 = vmatprep.subr.bf16.mxu0 %v3253_v47 }
 0x104   : > { %2311 = vmatpush3.bf16.xpose.msra.mxu1 %v3254_v48 }
 0x105   : > { %2313 = vmatprep.subr.bf16.mxu1 %v3255_v50 }
 0x108   : > { %2411 = vmatpush3.bf16.xpose.msra.mxu0 %v3256_v58 }
 0x109   : > { %2413 = vmatprep.subr.bf16.mxu0 %v3257_v62 }
 0x10c   : > { %2315 = vmatpush3.bf16.xpose.msra.mxu1 %v3258_v4 }
 0x10d   : > { %2317 = vmatprep.subr.bf16.mxu1 %v2316_v63 }
 0x110   : > { %2415 = vmatpush3.bf16.xpose.msra.mxu0 %v3259_v12 }
 0x111   : > { %2417 = vmatprep.subr.bf16.mxu0 %v3260_v22 }
 0x114   : > { %2319 = vmatpush3.bf16.xpose.msra.mxu1 %v2318_v21 }
 0x115   : > { %2321 = vmatprep.subr.bf16.mxu1 %v2320_v28 }
 0x118   : > { %2419 = vmatpush3.bf16.xpose.msra.mxu0 %v2985_v13  ;;  %v377_v13 = vpop.permute.xlu1 %376 }
 0x119   : > { %2421 = vmatprep.subr.bf16.mxu0 %v2991_v53 }
 0x11c   : > { %2323 = vmatpush3.bf16.xpose.msra.mxu1 %v2322_v39 }
 0x11d   : > { %2325 = vmatprep.subr.bf16.mxu1 %v2324_v43 }
 0x120   : > { %2423 = vmatpush3.bf16.xpose.msra.mxu0 %v3005_v54  ;;  %v1376_v54 = vadd.s32 %v1374_v20, %v1373_v31 }
 0x122   : > { %vm1378_vm4 = vcmp.lt.s32.totalorder %v1376_v54, 1200 }
 0x124   : > { %2327 = vmatpush3.bf16.xpose.msra.mxu1 %v2326_v44 }
 0x127   : > { %2231 = vmatmul.mubr.f32.vlgmr.msra.gmra.mrb[0].mxu0 %v3030_v57 }
 0x12b   : > { %2129 = vmatmul.mubr.f32.vlgmr.msra.gmra.mrb[0].mxu1 %v3033_v3 }
 0x1fa   : > { %v1361_v34 = vpop.f32.mrb[0].mxu0 }
 0x1fb   : > { %v1363_v53 = vpop.f32.mrb[1].mxu0 }
 0x1fe   : > { %v983_v35 = vpop.f32.mrb[0].mxu1 }
 0x1ff   : > { %v2424_v11 = vadd.f32 %v983_v35, %v377_v13  ;;  %v985_v0 = vpop.f32.mrb[1].mxu1 }
 0x200   : > { %v2426_v49 = vadd.f32 %v985_v0, %v377_v13 }
 0x201   : > { %v2425_v10 = vadd.f32 %v2424_v11, %v1361_v34 }
 0x202   : > { %v2427_v36 = vadd.f32 %v2426_v49, %v1363_v53 }
 0x203   : > { %1366 = vst [vmem:[%s2608_s25] sm:$0x3f] %v2425_v10  ;;  %v1383_v57 = vsel %vm1377_vm3, %v2425_v10, 0.0 }
 0x204   : > { %v1388_v3 = vand.u32 4294901760, %v1383_v57  ;;  %1367 = vst [vmem:[%s2608_s25 + $0x8] sm:$0x3f] %v2427_v36  ;;  %v1384_v1 = vsel %vm1378_vm4, %v2427_v36, 0.0  ;;  %v1863_v51 = vsel %vm1862_vm5, %v1383_v57, 0.0 }
 0x205   : > { %v1386_v8 = vand.u32 4294901760, %v1384_v1  ;;  %v1864_v25 = vsel %vm1862_vm5, %v1384_v1, 0.0 }
 0x206   : > { %v1459_v42 = vsub.f32 %v1383_v57, %v1388_v3  ;;  %v1865_v2 = vadd.f32 %v1864_v25, %v1863_v51 }
 0x207   : > { %v1453_v5 = vsub.f32 %v1384_v1, %v1386_v8  ;;  %1387 = vmatprep.subr.mxu0 %v1386_v8  ;;  %1629 = vmatprep.subr.mxu1 %v1386_v8 }
 0x208   : > { %1866 = vadd.xlane.f32.xlu1 %v1865_v2  ;;  %1389 = vmatpush1.xpose.msra.mxu0 %v1388_v3  ;;  %v1460_v18 = vand.u32 4294901760, %v1459_v42 }
 0x209   : > { %1631 = vmatpush1.xpose.msra.mxu1 %v1388_v3  ;;  %v1454_v45 = vand.u32 4294901760, %v1453_v5 }
 0x20a   : > { %v1461_v23 = vsub.f32 %v1459_v42, %v1460_v18 }
 0x20b   : > { %1697 = vmatprep.mubr.f32.mxu1 %v1454_v45  ;;  %1709 = vmatprep.subr.mxu1 %v1454_v45  ;;  %v1455_v17 = vsub.f32 %v1453_v5, %v1454_v45 }
 0x20c   : > { %1701 = vmatmul.mubr.f32.vlgmr.msra.gmra.mrb[2].mxu1 %v1460_v18  ;;  %v1462_v15 = vand.u32 4294901760, %v1461_v23 }
 0x20d   : > { %1713 = vmatpush1.xpose.msra.mxu1 %v1460_v18  ;;  %1777 = vmatprep.mubr.f32.mxu1 %v1386_v8  ;;  %v1456_v30 = vand.u32 4294901760, %v1455_v17 }
 0x20e   : > { %1785 = vmatprep.subr.mxu1 %v1386_v8 }
 0x20f   : > { %1457 = vmatprep.mubr.f32.mxu0 %v1456_v30  ;;  %1473 = vmatprep.subr.mxu0 %v1456_v30 }
 0x210   : > { %1463 = vmatmul.mubr.f32.vlgmr.msra.gmra.mrb[2].mxu0 %v1462_v15  ;;  %1779 = vmatmul.mubr.f32.vlgmr.msra.gmra.mrb[4].mxu1 %v1388_v3 }
 0x211   : > { %1479 = vmatpush1.xpose.msra.mxu0 %v1462_v15  ;;  %1787 = vmatpush1.xpose.msra.mxu1 %v1388_v3 }
 0x212   : > { %1543 = vmatprep.mubr.f32.mxu0 %v1386_v8  ;;  %1552 = vmatprep.subr.mxu0 %v1453_v5 }
 0x213   : > { %1851 = vmatprep.mubr.f32.mxu1 %v1386_v8 }
 0x214   : > { %1545 = vmatmul.mubr.f32.vlgmr.msra.gmra.mrb[4].mxu0 %v1388_v3  ;;  %1853 = vmatmul.mubr.f32.vlgmr.msra.gmra.mrb[6].mxu1 %v1388_v3 }
 0x215   : > { %1555 = vmatpush1.xpose.msra.mxu0 %v1459_v42  ;;  %1620 = vmatprep.mubr.f32.mxu0 %v1453_v5 }
 0x218   : > { %1623 = vmatmul.mubr.f32.vlgmr.msra.gmra.mrb[6].mxu0 %v1459_v42 }
 0x295   : > { %v1867_v38 = vpop.xlane.xlu1 %1866 }
 0x296   : > { %v1868_v40 = vadd.f32 %v1867_v38, %v1861_v46 }
 0x298   : > { %1870 = vst.msk [vmem:[%s2598_s11] sm:$0x3f] %vm1869_vm6, %v1868_v40 }
 0x2df   : > { %v1702_v6 = vpop.f32.mrb[2].mxu1 }
 0x2e0   : > { %v1704_v60 = vpop.f32.mrb[3].mxu1 }
 0x2e3   : > { %v1464_v59 = vpop.f32.mrb[2].mxu0  ;;  %v1780_v16 = vpop.f32.mrb[4].mxu1 }
 0x2e4   : > { %v1466_v61 = vpop.f32.mrb[3].mxu0  ;;  %v1782_v9 = vpop.f32.mrb[5].mxu1 }
 0x2e7   : > { %v1546_v33 = vpop.f32.mrb[4].mxu0  ;;  %v1854_v19 = vpop.f32.mrb[6].mxu1 }
 0x2e8   : > { %v1547_v41 = vadd.f32 %v1546_v33, %v1464_v59  ;;  %v1548_v7 = vpop.f32.mrb[5].mxu0  ;;  %v1856_v14 = vpop.f32.mrb[7].mxu1 }
 0x2eb   : > { %v1624_v24 = vpop.f32.mrb[6].mxu0 }
 0x2ec   : > { %v1625_v26 = vadd.f32 %v1624_v24, %v1547_v41  ;;  %v1626_v27 = vpop.f32.mrb[7].mxu0 }
 0x2ee   : > { %v1703_v32 = vadd.f32 %v1702_v6, %v1625_v26 }
 0x2f0   : > { %v1781_v37 = vadd.f32 %v1780_v16, %v1703_v32 }
 0x2f2   : > { %v1855_v47 = vadd.f32 %v1854_v19, %v1781_v37 }
 0x2f4   : > { %v1858_v48 = vadd.f32 %v1855_v47, %v1385_v29 }
 0x2f6   : > { %1860 = vst.msk [vmem:[%s2593_s8] sm:$0x3f] %vm1859_vm7, %v1858_v48 }
 0x2f7 PF: > { %s16_s22 = sadd.s32 1, %s2519_s22   ;;  %s3261_s18 = smov %s2511_s20 }
 0x2f8   : > { %p13_p10 = scmp.ge.s32.totalorder %s16_s22, 8   ;;  %s3262_s19 = smov %s2515_s21 }
 0x2f9   : > { %s3263_s20 = smov %s3266_s23  ;;  %s3264_s21 = smov %s3270_s24 }
 0x2fa   :  { %15 = sbr.rel (!%p13_p10) target bundleno = 3 (0x3), region = 90 }

</bundles_post_ra>
